<compile_context>
chip_gen: v7x
topology: tpu7x:2x2x1
jax: 0.10.0
libtpu: 0.0.40
codegen_flags: <defaults>
</compile_context>

<pallas_src>
import jax
import jax.numpy as jnp
from jax.experimental import pallas as pl
from jax.experimental.pallas import tpu as pltpu


# -----------------------------------------------------------------------------
# Fused kernel: GRU recurrence (input projection pre-hoisted) + selector head
# -----------------------------------------------------------------------------
def _selectornet_kernel(gi_ref, lens_ref, whh_ref, bhh_ref,
                        obj_ref, wf_ref, bf_ref, wr_ref, br_ref,
                        w1o_ref, w1r_ref, w1l_ref, b1_ref, w2t_ref, b2_ref,
                        out_ref):
    T, B, _ = gi_ref.shape
    H = whh_ref.shape[0]
    BN = obj_ref.shape[0]
    N = BN // B
    M = w1o_ref.shape[1]

    # ----------------- GRU recurrence (only h @ W_hh left in the serial chain) --
    whh = whh_ref[...]                       # (H, 3H), resident
    bhh = bhh_ref[...]                       # (1, 3H)
    lens = lens_ref[...]                     # (B, 1) int32, loaded once

    def gru_step(t, h):
        gi_t = gi_ref[t]                     # (B, 3H), precomputed x_t @ W_ih + b_ih
        gh = jnp.dot(h, whh, preferred_element_type=jnp.float32) + bhh
        # PyTorch GRU gate order: r, z, n
        r = jax.nn.sigmoid(gi_t[:, 0 * H:1 * H] + gh[:, 0 * H:1 * H])
        z = jax.nn.sigmoid(gi_t[:, 1 * H:2 * H] + gh[:, 1 * H:2 * H])
        n = jnp.tanh(gi_t[:, 2 * H:3 * H] + r * gh[:, 2 * H:3 * H])
        h_new = (1.0 - z) * n + z * h
        # pack_padded_sequence semantics: freeze h once t >= n_tokens[b]
        return jnp.where(t < lens, h_new, h)

    h_lang = jax.lax.fori_loop(0, T, gru_step,
                               jnp.zeros((B, H), jnp.float32), unroll=True)

    # ----------------- selector head -------------------------------------------
    obj = obj_ref[...]                       # (B*N, 4), batch-flattened

    # to_feature: Linear(4, F) + ReLU
    obj_feats = jnp.maximum(
        jnp.dot(obj, wf_ref[...], preferred_element_type=jnp.float32)
        + bf_ref[...], 0.0)                  # (B*N, F)

    # to_relation on pairwise differences, mean over the "other object" axis.
    # relu((o_i - o_j) @ Wr + br) == relu(p_i - p_j + br)  with p = obj @ Wr
    p = jnp.dot(obj, wr_ref[...], preferred_element_type=jnp.float32)  # (B*N, F)
    q = p + br_ref[...]                      # bias folded in exactly once
    inv_n = 1.0 / N
    rel_chunks = []
    for b in range(B):                       # static loops: pure VPU work, no matmuls
        pb = p[b * N:(b + 1) * N]            # (N, F)
        qb = q[b * N:(b + 1) * N]            # (N, F)
        acc = jnp.zeros_like(qb)
        for j in range(N):
            acc = acc + jnp.maximum(qb - pb[j:j + 1, :], 0.0)
        rel_chunks.append(acc * inv_n)
    rel_feats = jnp.concatenate(rel_chunks, axis=0)       # (B*N, F)

    # to_logit on concat(obj_feats, rel_feats, h_lang)  == split matmuls
    lang_proj = jnp.dot(h_lang, w1l_ref[...],
                        preferred_element_type=jnp.float32)            # (B, M)
    lang_full = jnp.concatenate(
        [jnp.broadcast_to(lang_proj[b:b + 1, :], (N, M)) for b in range(B)],
        axis=0)                                                         # (B*N, M)

    pre = (jnp.dot(obj_feats, w1o_ref[...], preferred_element_type=jnp.float32)
           + jnp.dot(rel_feats, w1r_ref[...], preferred_element_type=jnp.float32)
           + lang_full + b1_ref[...])
    hidden = jnp.maximum(pre, 0.0)           # (B*N, M)

    # final Linear(M, 1) as a lane reduction against the w2 row vector
    logits = jnp.sum(hidden * w2t_ref[...], axis=-1, keepdims=True) + b2_ref[...]
    out_ref[...] = logits                    # (B*N, 1) — only 16 values total


# -----------------------------------------------------------------------------
# Full forward (glue: embedding gather, hoisted input projection, plumbing)
# -----------------------------------------------------------------------------
def selector_forward(images, tokens, n_tokens, obj_bboxes, obj_optional_info, params):
    # images / obj_bboxes are unused in the torch forward
    del images, obj_bboxes
    B, T = tokens.shape
    N = obj_optional_info.shape[1]
    M = params['w1o'].shape[1]

    # glue: embedding gather (dropout_ratio_lang = 0 -> dropout is identity)
    embs = params['emb'][tokens]                                   # (B, T, D)
    # hoisted GRU input projection: one big matmul, fed to the kernel time-major
    gi = jnp.einsum('btd,dg->tbg', embs, params['wih'],
                    precision=jax.lax.Precision.HIGHEST) + params['bih']  # (T, B, 3H)
    lens = n_tokens.astype(jnp.int32).reshape(B, 1)
    obj_flat = obj_optional_info.reshape(B * N, 4).astype(jnp.float32)
    w2t = params['w2'].reshape(1, M)                               # (1, M) row vector

    vmem_specs = [pl.BlockSpec(memory_space=pltpu.MemorySpace.VMEM) for _ in range(15)]
    out = pl.pallas_call(
        _selectornet_kernel,
        out_shape=jax.ShapeDtypeStruct((B * N, 1), jnp.float32),
        in_specs=vmem_specs,
        out_specs=pl.BlockSpec(memory_space=pltpu.MemorySpace.VMEM),
    )(gi, lens, params['whh'], params['bhh'], obj_flat,
      params['wf'], params['bf'], params['wr'], params['br'],
      params['w1o'], params['w1r'], params['w1l'], params['b1'],
      w2t, params['b2'])
    return out.reshape(B, N)                 # matches torch `[:, :, 0]`


# -----------------------------------------------------------------------------
# Pure-JAX reference for verification (f32-accurate matmuls)
# -----------------------------------------------------------------------------
def reference_forward(tokens, n_tokens, obj_info, params):
    hp = jax.lax.Precision.HIGHEST
    embs = params['emb'][tokens]
    B, T, _ = embs.shape
    H = params['whh'].shape[0]
    h = jnp.zeros((B, H), jnp.float32)
    for t in range(T):
        x = embs[:, t, :]
        gi = jnp.dot(x, params['wih'], precision=hp) + params['bih']
        gh = jnp.dot(h, params['whh'], precision=hp) + params['bhh']
        r = jax.nn.sigmoid(gi[:, :H] + gh[:, :H])
        z = jax.nn.sigmoid(gi[:, H:2 * H] + gh[:, H:2 * H])
        n = jnp.tanh(gi[:, 2 * H:] + r * gh[:, 2 * H:])
        h_new = (1.0 - z) * n + z * h
        h = jnp.where((t < n_tokens)[:, None], h_new, h)
    h_lang = h
    obj_feats = jax.nn.relu(jnp.dot(obj_info, params['wf'], precision=hp) + params['bf'])
    diff = obj_info[:, :, None, :] - obj_info[:, None, :, :]
    rel = jax.nn.relu(jnp.einsum('bijk,kf->bijf', diff, params['wr'], precision=hp)
                      + params['br'])
    rel_feats = rel.mean(axis=2)
    pre = (jnp.dot(obj_feats, params['w1o'], precision=hp)
           + jnp.dot(rel_feats, params['w1r'], precision=hp)
           + jnp.dot(h_lang, params['w1l'], precision=hp)[:, None, :]
           + params['b1'])
    hidden = jax.nn.relu(pre)
    return (jnp.dot(hidden, params['w2'], precision=hp) + params['b2'])[:, :, 0]


if __name__ == "__main__":
    # small shapes consistent with the module
    B, T, V = 2, 8, 50          # batch, seq len, vocab ('main' tokens)
    D, H = 32, 128              # dim_token, dim_lang (hidden size, 1 layer, 1 dir)
    N, F, M = 8, 32, 128        # n_obj, dim_feature, dim_mlp

    key = jax.random.PRNGKey(0)
    keys = jax.random.split(key, 17)

    def nrm(k, shape, scale=0.1):
        return (scale * jax.random.normal(k, shape)).astype(jnp.float32)

    params = {
        'emb': nrm(keys[0], (V, D)).at[0].set(0.0),   # padding_idx=0 -> zero row
        'wih': nrm(keys[1], (D, 3 * H)),
        'whh': nrm(keys[2], (H, 3 * H)),
        'bih': nrm(keys[3], (1, 3 * H)),
        'bhh': nrm(keys[4], (1, 3 * H)),
        'wf':  nrm(keys[5], (4, F)),
        'bf':  nrm(keys[6], (1, F)),
        'wr':  nrm(keys[7], (4, F)),
        'br':  nrm(keys[8], (1, F)),
        'w1o': nrm(keys[9], (F, M)),
        'w1r': nrm(keys[10], (F, M)),
        'w1l': nrm(keys[11], (H, M)),
        'b1':  nrm(keys[12], (1, M)),
        'w2':  nrm(keys[13], (M, 1)),
        'b2':  nrm(keys[14], (1, 1)),
    }

    n_tokens = jnp.array([T, 5], dtype=jnp.int32)
    tokens = jax.random.randint(keys[15], (B, T), 1, V)
    tokens = jnp.where(jnp.arange(T)[None, :] < n_tokens[:, None], tokens, 0)
    obj_optional_info = nrm(keys[16], (B, N, 4), scale=1.0)

    # unused-in-forward inputs kept for signature parity with the torch module
    images = jnp.zeros((B, 3, 16, 16), jnp.float32)
    obj_bboxes = jnp.zeros((B, N, 4), jnp.float32)

    fwd = jax.jit(selector_forward)
    out = fwd(images, tokens, n_tokens, obj_bboxes, obj_optional_info, params)
    out = jax.block_until_ready(out)
    assert out.shape == (B, N)

    ref = reference_forward(tokens, n_tokens, obj_optional_info, params)
    max_diff = float(jnp.max(jnp.abs(out - ref)))
    assert jnp.allclose(out, ref, atol=2e-3, rtol=2e-3), (
        f"mismatch: max abs diff {max_diff}")

    print("KERNEL_OK")
</pallas_src>

<mosaic_0001>
module attributes {stable_mosaic.version = 11 : i64} {
  func.func @_selectornet_kernel(%arg0: memref<8x2x384xf32, #tpu.memory_space<vmem>>, %arg1: memref<2x1xi32, #tpu.memory_space<vmem>>, %arg2: memref<128x384xf32, #tpu.memory_space<vmem>>, %arg3: memref<1x384xf32, #tpu.memory_space<vmem>>, %arg4: memref<16x4xf32, #tpu.memory_space<vmem>>, %arg5: memref<4x32xf32, #tpu.memory_space<vmem>>, %arg6: memref<1x32xf32, #tpu.memory_space<vmem>>, %arg7: memref<4x32xf32, #tpu.memory_space<vmem>>, %arg8: memref<1x32xf32, #tpu.memory_space<vmem>>, %arg9: memref<32x128xf32, #tpu.memory_space<vmem>>, %arg10: memref<32x128xf32, #tpu.memory_space<vmem>>, %arg11: memref<128x128xf32, #tpu.memory_space<vmem>>, %arg12: memref<1x128xf32, #tpu.memory_space<vmem>>, %arg13: memref<1x128xf32, #tpu.memory_space<vmem>>, %arg14: memref<1x1xf32, #tpu.memory_space<vmem>>, %arg15: memref<16x1xf32, #tpu.memory_space<vmem>>) attributes {dimension_semantics = [], scalar_prefetch = 0 : i64, scratch_operands = 0 : i64, tpu.core_type = #tpu.core_type<tc>} {
    %c0 = arith.constant 0 : index
    %c0_0 = arith.constant 0 : index
    %0 = vector.load %arg2[%c0, %c0_0] : memref<128x384xf32, #tpu.memory_space<vmem>>, vector<128x384xf32>
    %c0_1 = arith.constant 0 : index
    %c0_2 = arith.constant 0 : index
    %1 = vector.load %arg3[%c0_1, %c0_2] : memref<1x384xf32, #tpu.memory_space<vmem>>, vector<1x384xf32>
    %c0_3 = arith.constant 0 : index
    %c0_4 = arith.constant 0 : index
    %2 = vector.load %arg1[%c0_3, %c0_4] : memref<2x1xi32, #tpu.memory_space<vmem>>, vector<2x1xi32>
    %cst = arith.constant 0.000000e+00 : f32
    %3 = vector.broadcast %cst : f32 to vector<2x128xf32>
    %c0_i32 = arith.constant 0 : i32
    %4 = arith.index_cast %c0_i32 : i32 to index
    %c0_5 = arith.constant 0 : index
    %c0_6 = arith.constant 0 : index
    %5 = vector.load %arg0[%4, %c0_5, %c0_6] : memref<8x2x384xf32, #tpu.memory_space<vmem>>, vector<1x2x384xf32>
    %6 = vector.shape_cast %5 : vector<1x2x384xf32> to vector<2x384xf32>
    %cst_7 = arith.constant dense<0.000000e+00> : vector<2x384xf32>
    %7 = tpu.matmul %3, %0, %cst_7 {dimension_numbers = #tpu.dot_dimension_numbers<[1], [0], [0], [1], [0, 0, 1, 1], [], []>} : vector<2x128xf32>, vector<128x384xf32>, vector<2x384xf32> -> vector<2x384xf32>
    %8 = vector.broadcast %1 : vector<1x384xf32> to vector<2x384xf32>
    %9 = arith.addf %7, %8 : vector<2x384xf32>
    %10 = vector.extract_strided_slice %6 {offsets = [0, 0], sizes = [2, 128], strides = [1, 1]} : vector<2x384xf32> to vector<2x128xf32>
    %11 = vector.extract_strided_slice %9 {offsets = [0, 0], sizes = [2, 128], strides = [1, 1]} : vector<2x384xf32> to vector<2x128xf32>
    %12 = arith.addf %10, %11 : vector<2x128xf32>
    %13 = arith.negf %12 : vector<2x128xf32>
    %14 = math.exp %13 : vector<2x128xf32>
    %cst_8 = arith.constant 1.000000e+00 : f32
    %15 = vector.broadcast %cst_8 : f32 to vector<2x128xf32>
    %16 = arith.addf %15, %14 : vector<2x128xf32>
    %17 = arith.divf %15, %16 : vector<2x128xf32>
    %18 = vector.extract_strided_slice %6 {offsets = [0, 128], sizes = [2, 128], strides = [1, 1]} : vector<2x384xf32> to vector<2x128xf32>
    %19 = vector.extract_strided_slice %9 {offsets = [0, 128], sizes = [2, 128], strides = [1, 1]} : vector<2x384xf32> to vector<2x128xf32>
    %20 = arith.addf %18, %19 : vector<2x128xf32>
    %21 = arith.negf %20 : vector<2x128xf32>
    %22 = math.exp %21 : vector<2x128xf32>
    %cst_9 = arith.constant 1.000000e+00 : f32
    %23 = vector.broadcast %cst_9 : f32 to vector<2x128xf32>
    %24 = arith.addf %23, %22 : vector<2x128xf32>
    %25 = arith.divf %23, %24 : vector<2x128xf32>
    %26 = vector.extract_strided_slice %6 {offsets = [0, 256], sizes = [2, 128], strides = [1, 1]} : vector<2x384xf32> to vector<2x128xf32>
    %27 = vector.extract_strided_slice %9 {offsets = [0, 256], sizes = [2, 128], strides = [1, 1]} : vector<2x384xf32> to vector<2x128xf32>
    %28 = arith.mulf %17, %27 : vector<2x128xf32>
    %29 = arith.addf %26, %28 : vector<2x128xf32>
    %30 = math.tanh %29 : vector<2x128xf32>
    %cst_10 = arith.constant 1.000000e+00 : f32
    %31 = vector.broadcast %cst_10 : f32 to vector<2x128xf32>
    %32 = arith.subf %31, %25 : vector<2x128xf32>
    %33 = arith.mulf %32, %30 : vector<2x128xf32>
    %34 = arith.mulf %25, %3 : vector<2x128xf32>
    %35 = arith.addf %33, %34 : vector<2x128xf32>
    %36 = vector.broadcast %c0_i32 : i32 to vector<2x1xi32>
    %37 = arith.cmpi slt, %36, %2 : vector<2x1xi32>
    %38 = vector.shape_cast %37 : vector<2x1xi1> to vector<2x1xi1>
    %39 = vector.broadcast %38 : vector<2x1xi1> to vector<2x128xi1>
    %40 = arith.select %39, %35, %3 : vector<2x128xi1>, vector<2x128xf32>
    %c1_i32 = arith.constant 1 : i32
    %41 = arith.index_cast %c1_i32 : i32 to index
    %c0_11 = arith.constant 0 : index
    %c0_12 = arith.constant 0 : index
    %42 = vector.load %arg0[%41, %c0_11, %c0_12] : memref<8x2x384xf32, #tpu.memory_space<vmem>>, vector<1x2x384xf32>
    %43 = vector.shape_cast %42 : vector<1x2x384xf32> to vector<2x384xf32>
    %cst_13 = arith.constant dense<0.000000e+00> : vector<2x384xf32>
    %44 = tpu.matmul %40, %0, %cst_13 {dimension_numbers = #tpu.dot_dimension_numbers<[1], [0], [0], [1], [0, 0, 1, 1], [], []>} : vector<2x128xf32>, vector<128x384xf32>, vector<2x384xf32> -> vector<2x384xf32>
    %45 = vector.broadcast %1 : vector<1x384xf32> to vector<2x384xf32>
    %46 = arith.addf %44, %45 : vector<2x384xf32>
    %47 = vector.extract_strided_slice %43 {offsets = [0, 0], sizes = [2, 128], strides = [1, 1]} : vector<2x384xf32> to vector<2x128xf32>
    %48 = vector.extract_strided_slice %46 {offsets = [0, 0], sizes = [2, 128], strides = [1, 1]} : vector<2x384xf32> to vector<2x128xf32>
    %49 = arith.addf %47, %48 : vector<2x128xf32>
    %50 = arith.negf %49 : vector<2x128xf32>
    %51 = math.exp %50 : vector<2x128xf32>
    %cst_14 = arith.constant 1.000000e+00 : f32
    %52 = vector.broadcast %cst_14 : f32 to vector<2x128xf32>
    %53 = arith.addf %52, %51 : vector<2x128xf32>
    %54 = arith.divf %52, %53 : vector<2x128xf32>
    %55 = vector.extract_strided_slice %43 {offsets = [0, 128], sizes = [2, 128], strides = [1, 1]} : vector<2x384xf32> to vector<2x128xf32>
    %56 = vector.extract_strided_slice %46 {offsets = [0, 128], sizes = [2, 128], strides = [1, 1]} : vector<2x384xf32> to vector<2x128xf32>
    %57 = arith.addf %55, %56 : vector<2x128xf32>
    %58 = arith.negf %57 : vector<2x128xf32>
    %59 = math.exp %58 : vector<2x128xf32>
    %cst_15 = arith.constant 1.000000e+00 : f32
    %60 = vector.broadcast %cst_15 : f32 to vector<2x128xf32>
    %61 = arith.addf %60, %59 : vector<2x128xf32>
    %62 = arith.divf %60, %61 : vector<2x128xf32>
    %63 = vector.extract_strided_slice %43 {offsets = [0, 256], sizes = [2, 128], strides = [1, 1]} : vector<2x384xf32> to vector<2x128xf32>
    %64 = vector.extract_strided_slice %46 {offsets = [0, 256], sizes = [2, 128], strides = [1, 1]} : vector<2x384xf32> to vector<2x128xf32>
    %65 = arith.mulf %54, %64 : vector<2x128xf32>
    %66 = arith.addf %63, %65 : vector<2x128xf32>
    %67 = math.tanh %66 : vector<2x128xf32>
    %cst_16 = arith.constant 1.000000e+00 : f32
    %68 = vector.broadcast %cst_16 : f32 to vector<2x128xf32>
    %69 = arith.subf %68, %62 : vector<2x128xf32>
    %70 = arith.mulf %69, %67 : vector<2x128xf32>
    %71 = arith.mulf %62, %40 : vector<2x128xf32>
    %72 = arith.addf %70, %71 : vector<2x128xf32>
    %73 = vector.broadcast %c1_i32 : i32 to vector<2x1xi32>
    %74 = arith.cmpi slt, %73, %2 : vector<2x1xi32>
    %75 = vector.shape_cast %74 : vector<2x1xi1> to vector<2x1xi1>
    %76 = vector.broadcast %75 : vector<2x1xi1> to vector<2x128xi1>
    %77 = arith.select %76, %72, %40 : vector<2x128xi1>, vector<2x128xf32>
    %c2_i32 = arith.constant 2 : i32
    %78 = arith.index_cast %c2_i32 : i32 to index
    %c0_17 = arith.constant 0 : index
    %c0_18 = arith.constant 0 : index
    %79 = vector.load %arg0[%78, %c0_17, %c0_18] : memref<8x2x384xf32, #tpu.memory_space<vmem>>, vector<1x2x384xf32>
    %80 = vector.shape_cast %79 : vector<1x2x384xf32> to vector<2x384xf32>
    %cst_19 = arith.constant dense<0.000000e+00> : vector<2x384xf32>
    %81 = tpu.matmul %77, %0, %cst_19 {dimension_numbers = #tpu.dot_dimension_numbers<[1], [0], [0], [1], [0, 0, 1, 1], [], []>} : vector<2x128xf32>, vector<128x384xf32>, vector<2x384xf32> -> vector<2x384xf32>
    %82 = vector.broadcast %1 : vector<1x384xf32> to vector<2x384xf32>
    %83 = arith.addf %81, %82 : vector<2x384xf32>
    %84 = vector.extract_strided_slice %80 {offsets = [0, 0], sizes = [2, 128], strides = [1, 1]} : vector<2x384xf32> to vector<2x128xf32>
    %85 = vector.extract_strided_slice %83 {offsets = [0, 0], sizes = [2, 128], strides = [1, 1]} : vector<2x384xf32> to vector<2x128xf32>
    %86 = arith.addf %84, %85 : vector<2x128xf32>
    %87 = arith.negf %86 : vector<2x128xf32>
    %88 = math.exp %87 : vector<2x128xf32>
    %cst_20 = arith.constant 1.000000e+00 : f32
    %89 = vector.broadcast %cst_20 : f32 to vector<2x128xf32>
    %90 = arith.addf %89, %88 : vector<2x128xf32>
    %91 = arith.divf %89, %90 : vector<2x128xf32>
    %92 = vector.extract_strided_slice %80 {offsets = [0, 128], sizes = [2, 128], strides = [1, 1]} : vector<2x384xf32> to vector<2x128xf32>
    %93 = vector.extract_strided_slice %83 {offsets = [0, 128], sizes = [2, 128], strides = [1, 1]} : vector<2x384xf32> to vector<2x128xf32>
    %94 = arith.addf %92, %93 : vector<2x128xf32>
    %95 = arith.negf %94 : vector<2x128xf32>
    %96 = math.exp %95 : vector<2x128xf32>
    %cst_21 = arith.constant 1.000000e+00 : f32
    %97 = vector.broadcast %cst_21 : f32 to vector<2x128xf32>
    %98 = arith.addf %97, %96 : vector<2x128xf32>
    %99 = arith.divf %97, %98 : vector<2x128xf32>
    %100 = vector.extract_strided_slice %80 {offsets = [0, 256], sizes = [2, 128], strides = [1, 1]} : vector<2x384xf32> to vector<2x128xf32>
    %101 = vector.extract_strided_slice %83 {offsets = [0, 256], sizes = [2, 128], strides = [1, 1]} : vector<2x384xf32> to vector<2x128xf32>
    %102 = arith.mulf %91, %101 : vector<2x128xf32>
    %103 = arith.addf %100, %102 : vector<2x128xf32>
    %104 = math.tanh %103 : vector<2x128xf32>
    %cst_22 = arith.constant 1.000000e+00 : f32
    %105 = vector.broadcast %cst_22 : f32 to vector<2x128xf32>
    %106 = arith.subf %105, %99 : vector<2x128xf32>
    %107 = arith.mulf %106, %104 : vector<2x128xf32>
    %108 = arith.mulf %99, %77 : vector<2x128xf32>
    %109 = arith.addf %107, %108 : vector<2x128xf32>
    %110 = vector.broadcast %c2_i32 : i32 to vector<2x1xi32>
    %111 = arith.cmpi slt, %110, %2 : vector<2x1xi32>
    %112 = vector.shape_cast %111 : vector<2x1xi1> to vector<2x1xi1>
    %113 = vector.broadcast %112 : vector<2x1xi1> to vector<2x128xi1>
    %114 = arith.select %113, %109, %77 : vector<2x128xi1>, vector<2x128xf32>
    %c3_i32 = arith.constant 3 : i32
    %115 = arith.index_cast %c3_i32 : i32 to index
    %c0_23 = arith.constant 0 : index
    %c0_24 = arith.constant 0 : index
    %116 = vector.load %arg0[%115, %c0_23, %c0_24] : memref<8x2x384xf32, #tpu.memory_space<vmem>>, vector<1x2x384xf32>
    %117 = vector.shape_cast %116 : vector<1x2x384xf32> to vector<2x384xf32>
    %cst_25 = arith.constant dense<0.000000e+00> : vector<2x384xf32>
    %118 = tpu.matmul %114, %0, %cst_25 {dimension_numbers = #tpu.dot_dimension_numbers<[1], [0], [0], [1], [0, 0, 1, 1], [], []>} : vector<2x128xf32>, vector<128x384xf32>, vector<2x384xf32> -> vector<2x384xf32>
    %119 = vector.broadcast %1 : vector<1x384xf32> to vector<2x384xf32>
    %120 = arith.addf %118, %119 : vector<2x384xf32>
    %121 = vector.extract_strided_slice %117 {offsets = [0, 0], sizes = [2, 128], strides = [1, 1]} : vector<2x384xf32> to vector<2x128xf32>
    %122 = vector.extract_strided_slice %120 {offsets = [0, 0], sizes = [2, 128], strides = [1, 1]} : vector<2x384xf32> to vector<2x128xf32>
    %123 = arith.addf %121, %122 : vector<2x128xf32>
    %124 = arith.negf %123 : vector<2x128xf32>
    %125 = math.exp %124 : vector<2x128xf32>
    %cst_26 = arith.constant 1.000000e+00 : f32
    %126 = vector.broadcast %cst_26 : f32 to vector<2x128xf32>
    %127 = arith.addf %126, %125 : vector<2x128xf32>
    %128 = arith.divf %126, %127 : vector<2x128xf32>
    %129 = vector.extract_strided_slice %117 {offsets = [0, 128], sizes = [2, 128], strides = [1, 1]} : vector<2x384xf32> to vector<2x128xf32>
    %130 = vector.extract_strided_slice %120 {offsets = [0, 128], sizes = [2, 128], strides = [1, 1]} : vector<2x384xf32> to vector<2x128xf32>
    %131 = arith.addf %129, %130 : vector<2x128xf32>
    %132 = arith.negf %131 : vector<2x128xf32>
    %133 = math.exp %132 : vector<2x128xf32>
    %cst_27 = arith.constant 1.000000e+00 : f32
    %134 = vector.broadcast %cst_27 : f32 to vector<2x128xf32>
    %135 = arith.addf %134, %133 : vector<2x128xf32>
    %136 = arith.divf %134, %135 : vector<2x128xf32>
    %137 = vector.extract_strided_slice %117 {offsets = [0, 256], sizes = [2, 128], strides = [1, 1]} : vector<2x384xf32> to vector<2x128xf32>
    %138 = vector.extract_strided_slice %120 {offsets = [0, 256], sizes = [2, 128], strides = [1, 1]} : vector<2x384xf32> to vector<2x128xf32>
    %139 = arith.mulf %128, %138 : vector<2x128xf32>
    %140 = arith.addf %137, %139 : vector<2x128xf32>
    %141 = math.tanh %140 : vector<2x128xf32>
    %cst_28 = arith.constant 1.000000e+00 : f32
    %142 = vector.broadcast %cst_28 : f32 to vector<2x128xf32>
    %143 = arith.subf %142, %136 : vector<2x128xf32>
    %144 = arith.mulf %143, %141 : vector<2x128xf32>
    %145 = arith.mulf %136, %114 : vector<2x128xf32>
    %146 = arith.addf %144, %145 : vector<2x128xf32>
    %147 = vector.broadcast %c3_i32 : i32 to vector<2x1xi32>
    %148 = arith.cmpi slt, %147, %2 : vector<2x1xi32>
    %149 = vector.shape_cast %148 : vector<2x1xi1> to vector<2x1xi1>
    %150 = vector.broadcast %149 : vector<2x1xi1> to vector<2x128xi1>
    %151 = arith.select %150, %146, %114 : vector<2x128xi1>, vector<2x128xf32>
    %c4_i32 = arith.constant 4 : i32
    %152 = arith.index_cast %c4_i32 : i32 to index
    %c0_29 = arith.constant 0 : index
    %c0_30 = arith.constant 0 : index
    %153 = vector.load %arg0[%152, %c0_29, %c0_30] : memref<8x2x384xf32, #tpu.memory_space<vmem>>, vector<1x2x384xf32>
    %154 = vector.shape_cast %153 : vector<1x2x384xf32> to vector<2x384xf32>
    %cst_31 = arith.constant dense<0.000000e+00> : vector<2x384xf32>
    %155 = tpu.matmul %151, %0, %cst_31 {dimension_numbers = #tpu.dot_dimension_numbers<[1], [0], [0], [1], [0, 0, 1, 1], [], []>} : vector<2x128xf32>, vector<128x384xf32>, vector<2x384xf32> -> vector<2x384xf32>
    %156 = vector.broadcast %1 : vector<1x384xf32> to vector<2x384xf32>
    %157 = arith.addf %155, %156 : vector<2x384xf32>
    %158 = vector.extract_strided_slice %154 {offsets = [0, 0], sizes = [2, 128], strides = [1, 1]} : vector<2x384xf32> to vector<2x128xf32>
    %159 = vector.extract_strided_slice %157 {offsets = [0, 0], sizes = [2, 128], strides = [1, 1]} : vector<2x384xf32> to vector<2x128xf32>
    %160 = arith.addf %158, %159 : vector<2x128xf32>
    %161 = arith.negf %160 : vector<2x128xf32>
    %162 = math.exp %161 : vector<2x128xf32>
    %cst_32 = arith.constant 1.000000e+00 : f32
    %163 = vector.broadcast %cst_32 : f32 to vector<2x128xf32>
    %164 = arith.addf %163, %162 : vector<2x128xf32>
    %165 = arith.divf %163, %164 : vector<2x128xf32>
    %166 = vector.extract_strided_slice %154 {offsets = [0, 128], sizes = [2, 128], strides = [1, 1]} : vector<2x384xf32> to vector<2x128xf32>
    %167 = vector.extract_strided_slice %157 {offsets = [0, 128], sizes = [2, 128], strides = [1, 1]} : vector<2x384xf32> to vector<2x128xf32>
    %168 = arith.addf %166, %167 : vector<2x128xf32>
    %169 = arith.negf %168 : vector<2x128xf32>
    %170 = math.exp %169 : vector<2x128xf32>
    %cst_33 = arith.constant 1.000000e+00 : f32
    %171 = vector.broadcast %cst_33 : f32 to vector<2x128xf32>
    %172 = arith.addf %171, %170 : vector<2x128xf32>
    %173 = arith.divf %171, %172 : vector<2x128xf32>
    %174 = vector.extract_strided_slice %154 {offsets = [0, 256], sizes = [2, 128], strides = [1, 1]} : vector<2x384xf32> to vector<2x128xf32>
    %175 = vector.extract_strided_slice %157 {offsets = [0, 256], sizes = [2, 128], strides = [1, 1]} : vector<2x384xf32> to vector<2x128xf32>
    %176 = arith.mulf %165, %175 : vector<2x128xf32>
    %177 = arith.addf %174, %176 : vector<2x128xf32>
    %178 = math.tanh %177 : vector<2x128xf32>
    %cst_34 = arith.constant 1.000000e+00 : f32
    %179 = vector.broadcast %cst_34 : f32 to vector<2x128xf32>
    %180 = arith.subf %179, %173 : vector<2x128xf32>
    %181 = arith.mulf %180, %178 : vector<2x128xf32>
    %182 = arith.mulf %173, %151 : vector<2x128xf32>
    %183 = arith.addf %181, %182 : vector<2x128xf32>
    %184 = vector.broadcast %c4_i32 : i32 to vector<2x1xi32>
    %185 = arith.cmpi slt, %184, %2 : vector<2x1xi32>
    %186 = vector.shape_cast %185 : vector<2x1xi1> to vector<2x1xi1>
    %187 = vector.broadcast %186 : vector<2x1xi1> to vector<2x128xi1>
    %188 = arith.select %187, %183, %151 : vector<2x128xi1>, vector<2x128xf32>
    %c5_i32 = arith.constant 5 : i32
    %189 = arith.index_cast %c5_i32 : i32 to index
    %c0_35 = arith.constant 0 : index
    %c0_36 = arith.constant 0 : index
    %190 = vector.load %arg0[%189, %c0_35, %c0_36] : memref<8x2x384xf32, #tpu.memory_space<vmem>>, vector<1x2x384xf32>
    %191 = vector.shape_cast %190 : vector<1x2x384xf32> to vector<2x384xf32>
    %cst_37 = arith.constant dense<0.000000e+00> : vector<2x384xf32>
    %192 = tpu.matmul %188, %0, %cst_37 {dimension_numbers = #tpu.dot_dimension_numbers<[1], [0], [0], [1], [0, 0, 1, 1], [], []>} : vector<2x128xf32>, vector<128x384xf32>, vector<2x384xf32> -> vector<2x384xf32>
    %193 = vector.broadcast %1 : vector<1x384xf32> to vector<2x384xf32>
    %194 = arith.addf %192, %193 : vector<2x384xf32>
    %195 = vector.extract_strided_slice %191 {offsets = [0, 0], sizes = [2, 128], strides = [1, 1]} : vector<2x384xf32> to vector<2x128xf32>
    %196 = vector.extract_strided_slice %194 {offsets = [0, 0], sizes = [2, 128], strides = [1, 1]} : vector<2x384xf32> to vector<2x128xf32>
    %197 = arith.addf %195, %196 : vector<2x128xf32>
    %198 = arith.negf %197 : vector<2x128xf32>
    %199 = math.exp %198 : vector<2x128xf32>
    %cst_38 = arith.constant 1.000000e+00 : f32
    %200 = vector.broadcast %cst_38 : f32 to vector<2x128xf32>
    %201 = arith.addf %200, %199 : vector<2x128xf32>
    %202 = arith.divf %200, %201 : vector<2x128xf32>
    %203 = vector.extract_strided_slice %191 {offsets = [0, 128], sizes = [2, 128], strides = [1, 1]} : vector<2x384xf32> to vector<2x128xf32>
    %204 = vector.extract_strided_slice %194 {offsets = [0, 128], sizes = [2, 128], strides = [1, 1]} : vector<2x384xf32> to vector<2x128xf32>
    %205 = arith.addf %203, %204 : vector<2x128xf32>
    %206 = arith.negf %205 : vector<2x128xf32>
    %207 = math.exp %206 : vector<2x128xf32>
    %cst_39 = arith.constant 1.000000e+00 : f32
    %208 = vector.broadcast %cst_39 : f32 to vector<2x128xf32>
    %209 = arith.addf %208, %207 : vector<2x128xf32>
    %210 = arith.divf %208, %209 : vector<2x128xf32>
    %211 = vector.extract_strided_slice %191 {offsets = [0, 256], sizes = [2, 128], strides = [1, 1]} : vector<2x384xf32> to vector<2x128xf32>
    %212 = vector.extract_strided_slice %194 {offsets = [0, 256], sizes = [2, 128], strides = [1, 1]} : vector<2x384xf32> to vector<2x128xf32>
    %213 = arith.mulf %202, %212 : vector<2x128xf32>
    %214 = arith.addf %211, %213 : vector<2x128xf32>
    %215 = math.tanh %214 : vector<2x128xf32>
    %cst_40 = arith.constant 1.000000e+00 : f32
    %216 = vector.broadcast %cst_40 : f32 to vector<2x128xf32>
    %217 = arith.subf %216, %210 : vector<2x128xf32>
    %218 = arith.mulf %217, %215 : vector<2x128xf32>
    %219 = arith.mulf %210, %188 : vector<2x128xf32>
    %220 = arith.addf %218, %219 : vector<2x128xf32>
    %221 = vector.broadcast %c5_i32 : i32 to vector<2x1xi32>
    %222 = arith.cmpi slt, %221, %2 : vector<2x1xi32>
    %223 = vector.shape_cast %222 : vector<2x1xi1> to vector<2x1xi1>
    %224 = vector.broadcast %223 : vector<2x1xi1> to vector<2x128xi1>
    %225 = arith.select %224, %220, %188 : vector<2x128xi1>, vector<2x128xf32>
    %c6_i32 = arith.constant 6 : i32
    %226 = arith.index_cast %c6_i32 : i32 to index
    %c0_41 = arith.constant 0 : index
    %c0_42 = arith.constant 0 : index
    %227 = vector.load %arg0[%226, %c0_41, %c0_42] : memref<8x2x384xf32, #tpu.memory_space<vmem>>, vector<1x2x384xf32>
    %228 = vector.shape_cast %227 : vector<1x2x384xf32> to vector<2x384xf32>
    %cst_43 = arith.constant dense<0.000000e+00> : vector<2x384xf32>
    %229 = tpu.matmul %225, %0, %cst_43 {dimension_numbers = #tpu.dot_dimension_numbers<[1], [0], [0], [1], [0, 0, 1, 1], [], []>} : vector<2x128xf32>, vector<128x384xf32>, vector<2x384xf32> -> vector<2x384xf32>
    %230 = vector.broadcast %1 : vector<1x384xf32> to vector<2x384xf32>
    %231 = arith.addf %229, %230 : vector<2x384xf32>
    %232 = vector.extract_strided_slice %228 {offsets = [0, 0], sizes = [2, 128], strides = [1, 1]} : vector<2x384xf32> to vector<2x128xf32>
    %233 = vector.extract_strided_slice %231 {offsets = [0, 0], sizes = [2, 128], strides = [1, 1]} : vector<2x384xf32> to vector<2x128xf32>
    %234 = arith.addf %232, %233 : vector<2x128xf32>
    %235 = arith.negf %234 : vector<2x128xf32>
    %236 = math.exp %235 : vector<2x128xf32>
    %cst_44 = arith.constant 1.000000e+00 : f32
    %237 = vector.broadcast %cst_44 : f32 to vector<2x128xf32>
    %238 = arith.addf %237, %236 : vector<2x128xf32>
    %239 = arith.divf %237, %238 : vector<2x128xf32>
    %240 = vector.extract_strided_slice %228 {offsets = [0, 128], sizes = [2, 128], strides = [1, 1]} : vector<2x384xf32> to vector<2x128xf32>
    %241 = vector.extract_strided_slice %231 {offsets = [0, 128], sizes = [2, 128], strides = [1, 1]} : vector<2x384xf32> to vector<2x128xf32>
    %242 = arith.addf %240, %241 : vector<2x128xf32>
    %243 = arith.negf %242 : vector<2x128xf32>
    %244 = math.exp %243 : vector<2x128xf32>
    %cst_45 = arith.constant 1.000000e+00 : f32
    %245 = vector.broadcast %cst_45 : f32 to vector<2x128xf32>
    %246 = arith.addf %245, %244 : vector<2x128xf32>
    %247 = arith.divf %245, %246 : vector<2x128xf32>
    %248 = vector.extract_strided_slice %228 {offsets = [0, 256], sizes = [2, 128], strides = [1, 1]} : vector<2x384xf32> to vector<2x128xf32>
    %249 = vector.extract_strided_slice %231 {offsets = [0, 256], sizes = [2, 128], strides = [1, 1]} : vector<2x384xf32> to vector<2x128xf32>
    %250 = arith.mulf %239, %249 : vector<2x128xf32>
    %251 = arith.addf %248, %250 : vector<2x128xf32>
    %252 = math.tanh %251 : vector<2x128xf32>
    %cst_46 = arith.constant 1.000000e+00 : f32
    %253 = vector.broadcast %cst_46 : f32 to vector<2x128xf32>
    %254 = arith.subf %253, %247 : vector<2x128xf32>
    %255 = arith.mulf %254, %252 : vector<2x128xf32>
    %256 = arith.mulf %247, %225 : vector<2x128xf32>
    %257 = arith.addf %255, %256 : vector<2x128xf32>
    %258 = vector.broadcast %c6_i32 : i32 to vector<2x1xi32>
    %259 = arith.cmpi slt, %258, %2 : vector<2x1xi32>
    %260 = vector.shape_cast %259 : vector<2x1xi1> to vector<2x1xi1>
    %261 = vector.broadcast %260 : vector<2x1xi1> to vector<2x128xi1>
    %262 = arith.select %261, %257, %225 : vector<2x128xi1>, vector<2x128xf32>
    %c7_i32 = arith.constant 7 : i32
    %263 = arith.index_cast %c7_i32 : i32 to index
    %c0_47 = arith.constant 0 : index
    %c0_48 = arith.constant 0 : index
    %264 = vector.load %arg0[%263, %c0_47, %c0_48] : memref<8x2x384xf32, #tpu.memory_space<vmem>>, vector<1x2x384xf32>
    %265 = vector.shape_cast %264 : vector<1x2x384xf32> to vector<2x384xf32>
    %cst_49 = arith.constant dense<0.000000e+00> : vector<2x384xf32>
    %266 = tpu.matmul %262, %0, %cst_49 {dimension_numbers = #tpu.dot_dimension_numbers<[1], [0], [0], [1], [0, 0, 1, 1], [], []>} : vector<2x128xf32>, vector<128x384xf32>, vector<2x384xf32> -> vector<2x384xf32>
    %267 = vector.broadcast %1 : vector<1x384xf32> to vector<2x384xf32>
    %268 = arith.addf %266, %267 : vector<2x384xf32>
    %269 = vector.extract_strided_slice %265 {offsets = [0, 0], sizes = [2, 128], strides = [1, 1]} : vector<2x384xf32> to vector<2x128xf32>
    %270 = vector.extract_strided_slice %268 {offsets = [0, 0], sizes = [2, 128], strides = [1, 1]} : vector<2x384xf32> to vector<2x128xf32>
    %271 = arith.addf %269, %270 : vector<2x128xf32>
    %272 = arith.negf %271 : vector<2x128xf32>
    %273 = math.exp %272 : vector<2x128xf32>
    %cst_50 = arith.constant 1.000000e+00 : f32
    %274 = vector.broadcast %cst_50 : f32 to vector<2x128xf32>
    %275 = arith.addf %274, %273 : vector<2x128xf32>
    %276 = arith.divf %274, %275 : vector<2x128xf32>
    %277 = vector.extract_strided_slice %265 {offsets = [0, 128], sizes = [2, 128], strides = [1, 1]} : vector<2x384xf32> to vector<2x128xf32>
    %278 = vector.extract_strided_slice %268 {offsets = [0, 128], sizes = [2, 128], strides = [1, 1]} : vector<2x384xf32> to vector<2x128xf32>
    %279 = arith.addf %277, %278 : vector<2x128xf32>
    %280 = arith.negf %279 : vector<2x128xf32>
    %281 = math.exp %280 : vector<2x128xf32>
    %cst_51 = arith.constant 1.000000e+00 : f32
    %282 = vector.broadcast %cst_51 : f32 to vector<2x128xf32>
    %283 = arith.addf %282, %281 : vector<2x128xf32>
    %284 = arith.divf %282, %283 : vector<2x128xf32>
    %285 = vector.extract_strided_slice %265 {offsets = [0, 256], sizes = [2, 128], strides = [1, 1]} : vector<2x384xf32> to vector<2x128xf32>
    %286 = vector.extract_strided_slice %268 {offsets = [0, 256], sizes = [2, 128], strides = [1, 1]} : vector<2x384xf32> to vector<2x128xf32>
    %287 = arith.mulf %276, %286 : vector<2x128xf32>
    %288 = arith.addf %285, %287 : vector<2x128xf32>
    %289 = math.tanh %288 : vector<2x128xf32>
    %cst_52 = arith.constant 1.000000e+00 : f32
    %290 = vector.broadcast %cst_52 : f32 to vector<2x128xf32>
    %291 = arith.subf %290, %284 : vector<2x128xf32>
    %292 = arith.mulf %291, %289 : vector<2x128xf32>
    %293 = arith.mulf %284, %262 : vector<2x128xf32>
    %294 = arith.addf %292, %293 : vector<2x128xf32>
    %295 = vector.broadcast %c7_i32 : i32 to vector<2x1xi32>
    %296 = arith.cmpi slt, %295, %2 : vector<2x1xi32>
    %297 = vector.shape_cast %296 : vector<2x1xi1> to vector<2x1xi1>
    %298 = vector.broadcast %297 : vector<2x1xi1> to vector<2x128xi1>
    %299 = arith.select %298, %294, %262 : vector<2x128xi1>, vector<2x128xf32>
    %c8_i32 = arith.constant 8 : i32
    %c0_53 = arith.constant 0 : index
    %c0_54 = arith.constant 0 : index
    %300 = vector.load %arg4[%c0_53, %c0_54] : memref<16x4xf32, #tpu.memory_space<vmem>>, vector<16x4xf32>
    %c0_55 = arith.constant 0 : index
    %c0_56 = arith.constant 0 : index
    %301 = vector.load %arg5[%c0_55, %c0_56] : memref<4x32xf32, #tpu.memory_space<vmem>>, vector<4x32xf32>
    %cst_57 = arith.constant dense<0.000000e+00> : vector<16x32xf32>
    %302 = tpu.matmul %300, %301, %cst_57 {dimension_numbers = #tpu.dot_dimension_numbers<[1], [0], [0], [1], [0, 0, 1, 1], [], []>} : vector<16x4xf32>, vector<4x32xf32>, vector<16x32xf32> -> vector<16x32xf32>
    %c0_58 = arith.constant 0 : index
    %c0_59 = arith.constant 0 : index
    %303 = vector.load %arg6[%c0_58, %c0_59] : memref<1x32xf32, #tpu.memory_space<vmem>>, vector<1x32xf32>
    %304 = vector.broadcast %303 : vector<1x32xf32> to vector<16x32xf32>
    %305 = arith.addf %302, %304 : vector<16x32xf32>
    %cst_60 = arith.constant 0.000000e+00 : f32
    %306 = vector.broadcast %cst_60 : f32 to vector<16x32xf32>
    %307 = arith.maximumf %305, %306 : vector<16x32xf32>
    %c0_61 = arith.constant 0 : index
    %c0_62 = arith.constant 0 : index
    %308 = vector.load %arg7[%c0_61, %c0_62] : memref<4x32xf32, #tpu.memory_space<vmem>>, vector<4x32xf32>
    %cst_63 = arith.constant dense<0.000000e+00> : vector<16x32xf32>
    %309 = tpu.matmul %300, %308, %cst_63 {dimension_numbers = #tpu.dot_dimension_numbers<[1], [0], [0], [1], [0, 0, 1, 1], [], []>} : vector<16x4xf32>, vector<4x32xf32>, vector<16x32xf32> -> vector<16x32xf32>
    %c0_64 = arith.constant 0 : index
    %c0_65 = arith.constant 0 : index
    %310 = vector.load %arg8[%c0_64, %c0_65] : memref<1x32xf32, #tpu.memory_space<vmem>>, vector<1x32xf32>
    %311 = vector.broadcast %310 : vector<1x32xf32> to vector<16x32xf32>
    %312 = arith.addf %309, %311 : vector<16x32xf32>
    %313 = vector.extract_strided_slice %309 {offsets = [0, 0], sizes = [8, 32], strides = [1, 1]} : vector<16x32xf32> to vector<8x32xf32>
    %314 = vector.extract_strided_slice %312 {offsets = [0, 0], sizes = [8, 32], strides = [1, 1]} : vector<16x32xf32> to vector<8x32xf32>
    %cst_66 = arith.constant 0.000000e+00 : f32
    %315 = vector.broadcast %cst_66 : f32 to vector<8x32xf32>
    %316 = vector.extract_strided_slice %313 {offsets = [0, 0], sizes = [1, 32], strides = [1, 1]} : vector<8x32xf32> to vector<1x32xf32>
    %317 = vector.broadcast %316 : vector<1x32xf32> to vector<8x32xf32>
    %318 = arith.subf %314, %317 : vector<8x32xf32>
    %cst_67 = arith.constant 0.000000e+00 : f32
    %319 = vector.broadcast %cst_67 : f32 to vector<8x32xf32>
    %320 = arith.maximumf %318, %319 : vector<8x32xf32>
    %321 = arith.addf %315, %320 : vector<8x32xf32>
    %322 = vector.extract_strided_slice %313 {offsets = [1, 0], sizes = [1, 32], strides = [1, 1]} : vector<8x32xf32> to vector<1x32xf32>
    %323 = vector.broadcast %322 : vector<1x32xf32> to vector<8x32xf32>
    %324 = arith.subf %314, %323 : vector<8x32xf32>
    %cst_68 = arith.constant 0.000000e+00 : f32
    %325 = vector.broadcast %cst_68 : f32 to vector<8x32xf32>
    %326 = arith.maximumf %324, %325 : vector<8x32xf32>
    %327 = arith.addf %321, %326 : vector<8x32xf32>
    %328 = vector.extract_strided_slice %313 {offsets = [2, 0], sizes = [1, 32], strides = [1, 1]} : vector<8x32xf32> to vector<1x32xf32>
    %329 = vector.broadcast %328 : vector<1x32xf32> to vector<8x32xf32>
    %330 = arith.subf %314, %329 : vector<8x32xf32>
    %cst_69 = arith.constant 0.000000e+00 : f32
    %331 = vector.broadcast %cst_69 : f32 to vector<8x32xf32>
    %332 = arith.maximumf %330, %331 : vector<8x32xf32>
    %333 = arith.addf %327, %332 : vector<8x32xf32>
    %334 = vector.extract_strided_slice %313 {offsets = [3, 0], sizes = [1, 32], strides = [1, 1]} : vector<8x32xf32> to vector<1x32xf32>
    %335 = vector.broadcast %334 : vector<1x32xf32> to vector<8x32xf32>
    %336 = arith.subf %314, %335 : vector<8x32xf32>
    %cst_70 = arith.constant 0.000000e+00 : f32
    %337 = vector.broadcast %cst_70 : f32 to vector<8x32xf32>
    %338 = arith.maximumf %336, %337 : vector<8x32xf32>
    %339 = arith.addf %333, %338 : vector<8x32xf32>
    %340 = vector.extract_strided_slice %313 {offsets = [4, 0], sizes = [1, 32], strides = [1, 1]} : vector<8x32xf32> to vector<1x32xf32>
    %341 = vector.broadcast %340 : vector<1x32xf32> to vector<8x32xf32>
    %342 = arith.subf %314, %341 : vector<8x32xf32>
    %cst_71 = arith.constant 0.000000e+00 : f32
    %343 = vector.broadcast %cst_71 : f32 to vector<8x32xf32>
    %344 = arith.maximumf %342, %343 : vector<8x32xf32>
    %345 = arith.addf %339, %344 : vector<8x32xf32>
    %346 = vector.extract_strided_slice %313 {offsets = [5, 0], sizes = [1, 32], strides = [1, 1]} : vector<8x32xf32> to vector<1x32xf32>
    %347 = vector.broadcast %346 : vector<1x32xf32> to vector<8x32xf32>
    %348 = arith.subf %314, %347 : vector<8x32xf32>
    %cst_72 = arith.constant 0.000000e+00 : f32
    %349 = vector.broadcast %cst_72 : f32 to vector<8x32xf32>
    %350 = arith.maximumf %348, %349 : vector<8x32xf32>
    %351 = arith.addf %345, %350 : vector<8x32xf32>
    %352 = vector.extract_strided_slice %313 {offsets = [6, 0], sizes = [1, 32], strides = [1, 1]} : vector<8x32xf32> to vector<1x32xf32>
    %353 = vector.broadcast %352 : vector<1x32xf32> to vector<8x32xf32>
    %354 = arith.subf %314, %353 : vector<8x32xf32>
    %cst_73 = arith.constant 0.000000e+00 : f32
    %355 = vector.broadcast %cst_73 : f32 to vector<8x32xf32>
    %356 = arith.maximumf %354, %355 : vector<8x32xf32>
    %357 = arith.addf %351, %356 : vector<8x32xf32>
    %358 = vector.extract_strided_slice %313 {offsets = [7, 0], sizes = [1, 32], strides = [1, 1]} : vector<8x32xf32> to vector<1x32xf32>
    %359 = vector.broadcast %358 : vector<1x32xf32> to vector<8x32xf32>
    %360 = arith.subf %314, %359 : vector<8x32xf32>
    %cst_74 = arith.constant 0.000000e+00 : f32
    %361 = vector.broadcast %cst_74 : f32 to vector<8x32xf32>
    %362 = arith.maximumf %360, %361 : vector<8x32xf32>
    %363 = arith.addf %357, %362 : vector<8x32xf32>
    %cst_75 = arith.constant 1.250000e-01 : f32
    %364 = vector.broadcast %cst_75 : f32 to vector<8x32xf32>
    %365 = arith.mulf %363, %364 : vector<8x32xf32>
    %366 = vector.extract_strided_slice %309 {offsets = [8, 0], sizes = [8, 32], strides = [1, 1]} : vector<16x32xf32> to vector<8x32xf32>
    %367 = vector.extract_strided_slice %312 {offsets = [8, 0], sizes = [8, 32], strides = [1, 1]} : vector<16x32xf32> to vector<8x32xf32>
    %cst_76 = arith.constant 0.000000e+00 : f32
    %368 = vector.broadcast %cst_76 : f32 to vector<8x32xf32>
    %369 = vector.extract_strided_slice %366 {offsets = [0, 0], sizes = [1, 32], strides = [1, 1]} : vector<8x32xf32> to vector<1x32xf32>
    %370 = vector.broadcast %369 : vector<1x32xf32> to vector<8x32xf32>
    %371 = arith.subf %367, %370 : vector<8x32xf32>
    %cst_77 = arith.constant 0.000000e+00 : f32
    %372 = vector.broadcast %cst_77 : f32 to vector<8x32xf32>
    %373 = arith.maximumf %371, %372 : vector<8x32xf32>
    %374 = arith.addf %368, %373 : vector<8x32xf32>
    %375 = vector.extract_strided_slice %366 {offsets = [1, 0], sizes = [1, 32], strides = [1, 1]} : vector<8x32xf32> to vector<1x32xf32>
    %376 = vector.broadcast %375 : vector<1x32xf32> to vector<8x32xf32>
    %377 = arith.subf %367, %376 : vector<8x32xf32>
    %cst_78 = arith.constant 0.000000e+00 : f32
    %378 = vector.broadcast %cst_78 : f32 to vector<8x32xf32>
    %379 = arith.maximumf %377, %378 : vector<8x32xf32>
    %380 = arith.addf %374, %379 : vector<8x32xf32>
    %381 = vector.extract_strided_slice %366 {offsets = [2, 0], sizes = [1, 32], strides = [1, 1]} : vector<8x32xf32> to vector<1x32xf32>
    %382 = vector.broadcast %381 : vector<1x32xf32> to vector<8x32xf32>
    %383 = arith.subf %367, %382 : vector<8x32xf32>
    %cst_79 = arith.constant 0.000000e+00 : f32
    %384 = vector.broadcast %cst_79 : f32 to vector<8x32xf32>
    %385 = arith.maximumf %383, %384 : vector<8x32xf32>
    %386 = arith.addf %380, %385 : vector<8x32xf32>
    %387 = vector.extract_strided_slice %366 {offsets = [3, 0], sizes = [1, 32], strides = [1, 1]} : vector<8x32xf32> to vector<1x32xf32>
    %388 = vector.broadcast %387 : vector<1x32xf32> to vector<8x32xf32>
    %389 = arith.subf %367, %388 : vector<8x32xf32>
    %cst_80 = arith.constant 0.000000e+00 : f32
    %390 = vector.broadcast %cst_80 : f32 to vector<8x32xf32>
    %391 = arith.maximumf %389, %390 : vector<8x32xf32>
    %392 = arith.addf %386, %391 : vector<8x32xf32>
    %393 = vector.extract_strided_slice %366 {offsets = [4, 0], sizes = [1, 32], strides = [1, 1]} : vector<8x32xf32> to vector<1x32xf32>
    %394 = vector.broadcast %393 : vector<1x32xf32> to vector<8x32xf32>
    %395 = arith.subf %367, %394 : vector<8x32xf32>
    %cst_81 = arith.constant 0.000000e+00 : f32
    %396 = vector.broadcast %cst_81 : f32 to vector<8x32xf32>
    %397 = arith.maximumf %395, %396 : vector<8x32xf32>
    %398 = arith.addf %392, %397 : vector<8x32xf32>
    %399 = vector.extract_strided_slice %366 {offsets = [5, 0], sizes = [1, 32], strides = [1, 1]} : vector<8x32xf32> to vector<1x32xf32>
    %400 = vector.broadcast %399 : vector<1x32xf32> to vector<8x32xf32>
    %401 = arith.subf %367, %400 : vector<8x32xf32>
    %cst_82 = arith.constant 0.000000e+00 : f32
    %402 = vector.broadcast %cst_82 : f32 to vector<8x32xf32>
    %403 = arith.maximumf %401, %402 : vector<8x32xf32>
    %404 = arith.addf %398, %403 : vector<8x32xf32>
    %405 = vector.extract_strided_slice %366 {offsets = [6, 0], sizes = [1, 32], strides = [1, 1]} : vector<8x32xf32> to vector<1x32xf32>
    %406 = vector.broadcast %405 : vector<1x32xf32> to vector<8x32xf32>
    %407 = arith.subf %367, %406 : vector<8x32xf32>
    %cst_83 = arith.constant 0.000000e+00 : f32
    %408 = vector.broadcast %cst_83 : f32 to vector<8x32xf32>
    %409 = arith.maximumf %407, %408 : vector<8x32xf32>
    %410 = arith.addf %404, %409 : vector<8x32xf32>
    %411 = vector.extract_strided_slice %366 {offsets = [7, 0], sizes = [1, 32], strides = [1, 1]} : vector<8x32xf32> to vector<1x32xf32>
    %412 = vector.broadcast %411 : vector<1x32xf32> to vector<8x32xf32>
    %413 = arith.subf %367, %412 : vector<8x32xf32>
    %cst_84 = arith.constant 0.000000e+00 : f32
    %414 = vector.broadcast %cst_84 : f32 to vector<8x32xf32>
    %415 = arith.maximumf %413, %414 : vector<8x32xf32>
    %416 = arith.addf %410, %415 : vector<8x32xf32>
    %cst_85 = arith.constant 1.250000e-01 : f32
    %417 = vector.broadcast %cst_85 : f32 to vector<8x32xf32>
    %418 = arith.mulf %416, %417 : vector<8x32xf32>
    %419 = tpu.concatenate %365, %418 in 0 : vector<8x32xf32>, vector<8x32xf32> -> vector<16x32xf32>
    %c0_86 = arith.constant 0 : index
    %c0_87 = arith.constant 0 : index
    %420 = vector.load %arg11[%c0_86, %c0_87] : memref<128x128xf32, #tpu.memory_space<vmem>>, vector<128x128xf32>
    %cst_88 = arith.constant dense<0.000000e+00> : vector<2x128xf32>
    %421 = tpu.matmul %299, %420, %cst_88 {dimension_numbers = #tpu.dot_dimension_numbers<[1], [0], [0], [1], [0, 0, 1, 1], [], []>} : vector<2x128xf32>, vector<128x128xf32>, vector<2x128xf32> -> vector<2x128xf32>
    %422 = vector.extract_strided_slice %421 {offsets = [0, 0], sizes = [1, 128], strides = [1, 1]} : vector<2x128xf32> to vector<1x128xf32>
    %423 = vector.shape_cast %422 : vector<1x128xf32> to vector<1x128xf32>
    %424 = vector.broadcast %423 : vector<1x128xf32> to vector<8x128xf32>
    %425 = vector.extract_strided_slice %421 {offsets = [1, 0], sizes = [1, 128], strides = [1, 1]} : vector<2x128xf32> to vector<1x128xf32>
    %426 = vector.shape_cast %425 : vector<1x128xf32> to vector<1x128xf32>
    %427 = vector.broadcast %426 : vector<1x128xf32> to vector<8x128xf32>
    %428 = tpu.concatenate %424, %427 in 0 : vector<8x128xf32>, vector<8x128xf32> -> vector<16x128xf32>
    %c0_89 = arith.constant 0 : index
    %c0_90 = arith.constant 0 : index
    %429 = vector.load %arg9[%c0_89, %c0_90] : memref<32x128xf32, #tpu.memory_space<vmem>>, vector<32x128xf32>
    %cst_91 = arith.constant dense<0.000000e+00> : vector<16x128xf32>
    %430 = tpu.matmul %307, %429, %cst_91 {dimension_numbers = #tpu.dot_dimension_numbers<[1], [0], [0], [1], [0, 0, 1, 1], [], []>} : vector<16x32xf32>, vector<32x128xf32>, vector<16x128xf32> -> vector<16x128xf32>
    %c0_92 = arith.constant 0 : index
    %c0_93 = arith.constant 0 : index
    %431 = vector.load %arg10[%c0_92, %c0_93] : memref<32x128xf32, #tpu.memory_space<vmem>>, vector<32x128xf32>
    %cst_94 = arith.constant dense<0.000000e+00> : vector<16x128xf32>
    %432 = tpu.matmul %419, %431, %cst_94 {dimension_numbers = #tpu.dot_dimension_numbers<[1], [0], [0], [1], [0, 0, 1, 1], [], []>} : vector<16x32xf32>, vector<32x128xf32>, vector<16x128xf32> -> vector<16x128xf32>
    %433 = arith.addf %430, %432 : vector<16x128xf32>
    %434 = arith.addf %433, %428 : vector<16x128xf32>
    %c0_95 = arith.constant 0 : index
    %c0_96 = arith.constant 0 : index
    %435 = vector.load %arg12[%c0_95, %c0_96] : memref<1x128xf32, #tpu.memory_space<vmem>>, vector<1x128xf32>
    %436 = vector.broadcast %435 : vector<1x128xf32> to vector<16x128xf32>
    %437 = arith.addf %434, %436 : vector<16x128xf32>
    %cst_97 = arith.constant 0.000000e+00 : f32
    %438 = vector.broadcast %cst_97 : f32 to vector<16x128xf32>
    %439 = arith.maximumf %437, %438 : vector<16x128xf32>
    %c0_98 = arith.constant 0 : index
    %c0_99 = arith.constant 0 : index
    %440 = vector.load %arg13[%c0_98, %c0_99] : memref<1x128xf32, #tpu.memory_space<vmem>>, vector<1x128xf32>
    %441 = vector.broadcast %440 : vector<1x128xf32> to vector<16x128xf32>
    %442 = arith.mulf %439, %441 : vector<16x128xf32>
    %cst_100 = arith.constant dense<0.000000e+00> : vector<16xf32>
    %443 = vector.multi_reduction <add>, %442, %cst_100 [1] : vector<16x128xf32> to vector<16xf32>
    %444 = vector.shape_cast %443 : vector<16xf32> to vector<16x1xf32>
    %c0_101 = arith.constant 0 : index
    %c0_102 = arith.constant 0 : index
    %445 = vector.load %arg14[%c0_101, %c0_102] : memref<1x1xf32, #tpu.memory_space<vmem>>, vector<1x1xf32>
    %446 = vector.broadcast %445 : vector<1x1xf32> to vector<16x1xf32>
    %447 = arith.addf %444, %446 : vector<16x1xf32>
    %c0_103 = arith.constant 0 : index
    %c0_104 = arith.constant 0 : index
    %448 = vector.load %arg15[%c0_103, %c0_104] : memref<16x1xf32, #tpu.memory_space<vmem>>, vector<16x1xf32>
    tpu.vector_store %arg15[%c0_103, %c0_104], %447 {strides = array<i32>} : memref<16x1xf32, #tpu.memory_space<vmem>>, vector<16x1xf32>,
    return
  }
}

</mosaic_0001>

<bundles_post_ra>
// kernel: selector_forward.1
= control target key start
LH: loop header
LB: loop body
LE: loop exit
PB: predicated region body
PF: predicated region fallthrough
CT: control target
= control target key end

     0   :  { %s4167_s0 = inlined_call_operand.vmem [shape: f32[8,2,384], index: 0, kind: input, shape index: {}]   ;;  %s4168_s1 = inlined_call_operand.vmem [shape: s32[2,1], index: 1, kind: input, shape index: {}]   ;;  %s4169_s2 = inlined_call_operand.vmem [shape: f32[128,384], index: 2, kind: input, shape index: {}]   ;;  %s4170_s3 = inlined_call_operand.vmem [shape: f32[1,384], index: 3, kind: input, shape index: {}]   ;;  %s4171_s4 = inlined_call_operand.vmem [shape: f32[16,4], index: 4, kind: input, shape index: {}]   ;;  %s4172_s5 = inlined_call_operand.vmem [shape: f32[4,32], index: 5, kind: input, shape index: {}]   ;;  %s4173_s6 = inlined_call_operand.vmem [shape: f32[1,32], index: 6, kind: input, shape index: {}]   ;;  %s4174_s7 = inlined_call_operand.vmem [shape: f32[4,32], index: 7, kind: input, shape index: {}]   ;;  %s4175_s8 = inlined_call_operand.vmem [shape: f32[1,32], index: 8, kind: input, shape index: {}]   ;;  %s4176_s9 = inlined_call_operand.vmem [shape: f32[32,128], index: 9, kind: input, shape index: {}]   ;;  %s4177_s10 = inlined_call_operand.hbm [shape: f32[32,128], index: 10, kind: input, shape index: {}]   ;;  %s4178_s11 = inlined_call_operand.vmem [shape: f32[128,128], index: 11, kind: input, shape index: {}]   ;;  %s4179_s12 = inlined_call_operand.vmem [shape: f32[1,128], index: 12, kind: input, shape index: {}]   ;;  %s4180_s13 = inlined_call_operand.vmem [shape: f32[1,128], index: 13, kind: input, shape index: {}]   ;;  %s4181_s14 = inlined_call_operand.<no memory space> [shape: f32[1,1], index: 14, kind: input, shape index: {}]   ;;  %s4182_s15 = inlined_call_operand.vmem [shape: f32[16,1], index: 15, kind: output, shape index: {}]  }
   0x1   :  { %v20_v0 = vstv %s4181_s14 }
   0x2   :  { %21 = vst [vmem:[#allocation2] sm:$0x1] %v20_v0 }
   0x3   :  { %22 = vsyncpa [#allocation4], 0  ;;  %s3308_s20 = smov [#allocation3]   ;;  %s3284_s24 = scalar_lea.hbm %s4177_s10, 512 }
   0x4   :  { %s48_s21 = sshll.u32 %s3308_s20, 4  ;;  %p3285_p0 = scmp.ne.s32.totalorder %s4177_s10, %s3284_s24  ;;  %s49_s21 = int_to_ptr.vmem [resolvable:$true] %s48_s21 }
   0x5   :  { %p3288_p1 = scmp.lt.u32.totalorder %s3284_s24, %s4177_s10 }
   0x7   :  { %p3290_p2 = pnand %p3288_p1, %p3285_p0 }
   0x9   :  { %3293 = shalt.err (!%p3290_p2)
}
   0xa   :  { %s3294_s14 = scalar_lea.vmem %s49_s21, 512  ;;  %p3299_p4 = scmp.lt.s32.totalorder %s49_s21, %s49_s21 }
   0xb   :  { %p3295_p3 = scmp.ne.s32.totalorder %s49_s21, %s3294_s14  ;;  %p3300_p5 = scmp.lt.s32.totalorder %s3294_s14, %s3294_s14 }
   0xd   :  { %p3301_p6 = por %p3300_p5, %p3299_p4 }
   0xf   :  { %p3302_p7 = pnand %p3301_p6, %p3295_p3 }
  0x11   :  { %3305 = shalt.err (!%p3302_p7)
}
  0x12   :  { %s3309_s29 = smov 128   ;;  %s3310_s30 = smov 8  }
  0x13   :  { %54 = dma.hbm_to_vmem [thread:$0]  %s4177_s10, 512, %s49_s21, [#allocation4], %s3309_s29, %s3309_s29, %s3310_s30  }
  0x14   :  { %3306 = dma.done.wait [#allocation4], 512  }
  0x15   :  { %3307 = vsyncadd [#allocation4], 4294966784  ;;  %v3311_v1 = vmov 0.0|0.0   ;;  %v3312_v2 = vmov 0.0   ;;  %vm3313_vm0 = vmmov 0   ;;  %v3314_v3 = vmov 0  }
  0x16   :  { %2737 = vmatprep.subr.bf16.mxu1 %v3311_v1  ;;  %197 = vmatprep.mubr.f32.mxu0 %v3312_v2  ;;  %v67_v4 = vld [vmem:[%s4169_s2 + $0x8] sm:$0xff]  ;;  %v70_v5 = vld [vmem:[%s4169_s2 + $0x20] sm:$0xff]  ;;  %v69_v8 = vld [vmem:[%s4169_s2 + $0x18] sm:$0xff]  ;;  %vm1556_vm15 = vcmask 1043456  }
  0x17   :  { %2390 = vmatprep.mubr.msk.f32.mxu1 %vm3313_vm0, %v3312_v2  ;;  %3202 = vset.pattern.permute.xlu0 %v3314_v3  ;;  %v66_v6 = vld [vmem:[%s4169_s2] sm:$0xff]  ;;  %v3425_v7 = vpack.c.bf16 %v70_v5, %v67_v4  ;;  %v73_v9 = vld [vmem:[%s4169_s2 + $0x38] sm:$0xff]  ;;  %v76_v10 = vld [vmem:[%s4169_s2 + $0x50] sm:$0xff] }
  0x18   :  { %3203 = vset.pattern.permute.xlu1 %v3314_v3  ;;  %v3436_v11 = vpack.c.bf16 %v69_v8, %v66_v6  ;;  %v3438_v12 = vpack.c.bf16 %v76_v10, %v73_v9  ;;  %v72_v13 = vld [vmem:[%s4169_s2 + $0x30] sm:$0xff]  ;;  %v75_v14 = vld [vmem:[%s4169_s2 + $0x48] sm:$0xff]  ;;  %v82_v16 = vld [vmem:[%s4169_s2 + $0x80] sm:$0xff] }
  0x19   :  { %v79_v15 = vld [vmem:[%s4169_s2 + $0x68] sm:$0xff]  ;;  %2706 = vmatprep.subr.bf16.mxu0 %v3425_v7  ;;  %v3454_v17 = vpack.c.bf16 %v75_v14, %v72_v13  ;;  %v78_v19 = vld [vmem:[%s4169_s2 + $0x60] sm:$0xff]  ;;  %v81_v20 = vld [vmem:[%s4169_s2 + $0x78] sm:$0xff] }
  0x1a   :  { %2708 = vmatpush1.bf16.msra.mxu0 %v3436_v11  ;;  %v3457_v18 = vpack.c.bf16 %v82_v16, %v79_v15  ;;  %v85_v21 = vld [vmem:[%s4169_s2 + $0x98] sm:$0xff]  ;;  %v88_v22 = vld [vmem:[%s4169_s2 + $0xb0] sm:$0xff]  ;;  %v3472_v23 = vpack.c.bf16 %v81_v20, %v78_v19  ;;  %v87_v26 = vld [vmem:[%s4169_s2 + $0xa8] sm:$0xff] }
  0x1b   :  { %2710 = vmatprep.subr.bf16.mxu0 %v3438_v12  ;;  %v3475_v24 = vpack.c.bf16 %v88_v22, %v85_v21  ;;  %v84_v25 = vld [vmem:[%s4169_s2 + $0x90] sm:$0xff]  ;;  %v91_v27 = vld [vmem:[%s4169_s2 + $0xc8] sm:$0xff]  ;;  %v94_v28 = vld [vmem:[%s4169_s2 + $0xe0] sm:$0xff] }
  0x1c   :  { %v68_v29 = vld [vmem:[%s4169_s2 + $0x10] sm:$0xff]  ;;  %v71_v30 = vld [vmem:[%s4169_s2 + $0x28] sm:$0xff]  ;;  %v74_v32 = vld [vmem:[%s4169_s2 + $0x40] sm:$0xff]  ;;  %v3504_v34 = vpack.c.bf16 %v87_v26, %v84_v25  ;;  %v3507_v35 = vpack.c.bf16 %v94_v28, %v91_v27  ;;  %v118_v27 = vlaneseq }
  0x1d   :  { %v3495_v31 = vpack.c.bf16 %v71_v30, %v68_v29  ;;  %v77_v33 = vld [vmem:[%s4169_s2 + $0x58] sm:$0xff]  ;;  %v90_v36 = vld [vmem:[%s4169_s2 + $0xc0] sm:$0xff]  ;;  %v100_v40 = vld [vmem:[%s4169_s2 + $0x110] sm:$0xff] }
  0x1e   :  { %2712 = vmatpush1.bf16.msra.mxu0 %v3454_v17  ;;  %v93_v37 = vld [vmem:[%s4169_s2 + $0xd8] sm:$0xff]  ;;  %v3519_v39 = vpack.c.bf16 %v77_v33, %v74_v32  ;;  %v80_v41 = vld [vmem:[%s4169_s2 + $0x70] sm:$0xff]  ;;  %v83_v42 = vld [vmem:[%s4169_s2 + $0x88] sm:$0xff]  ;;  %v3691_v28 = vshrl.u32 %v118_v27, 7 }
  0x1f   :  { %2714 = vmatprep.subr.bf16.mxu0 %v3457_v18  ;;  %v97_v38 = vld [vmem:[%s4169_s2 + $0xf8] sm:$0xff]  ;;  %2739 = vmatpush3.bf16.msra.mxu1 %v3495_v31  ;;  %v3532_v43 = vpack.c.bf16 %v93_v37, %v90_v36  ;;  %v3537_v44 = vld [vmem:[%s4168_s1] sm:$0x3]  ;;  %v96_v46 = vld [vmem:[%s4169_s2 + $0xf0] sm:$0xff]  ;;  %v3552_v49 = vpack.c.bf16 %v83_v42, %v80_v41 }
  0x20   :  { %2740 = vmatprep.subr.bf16.mxu1 %v3311_v1  ;;  %v3540_v45 = vpack.c.bf16 %v100_v40, %v97_v38  ;;  %v99_v47 = vld [vmem:[%s4169_s2 + $0x108] sm:$0xff]  ;;  %vm300_vm1 = vcmp.gt.s32.totalorder %v3537_v44, 0  ;;  %vm476_vm2 = vcmp.gt.s32.totalorder %v3537_v44, 1  ;;  %v106_v50 = vld [vmem:[%s4169_s2 + $0x140] sm:$0xff]  ;;  %v89_v52 = vld [vmem:[%s4169_s2 + $0xb8] sm:$0xff]  ;;  %vm1004_vm3 = vcmp.gt.s32.totalorder %v3537_v44, 4 }
  0x21   :  { %v103_v48 = vld [vmem:[%s4169_s2 + $0x128] sm:$0xff]  ;;  %v86_v51 = vld [vmem:[%s4169_s2 + $0xa0] sm:$0xff]  ;;  %v301_v53 = vsel %vm300_vm1, 1, %v3314_v3  ;;  %v3568_v54 = vpack.c.bf16 %v99_v47, %v96_v46  ;;  %v477_v55 = vsel %vm476_vm2, 1, %v3314_v3  ;;  %v105_v58 = vld [vmem:[%s4169_s2 + $0x138] sm:$0xff]  ;;  %v1005_v4 = vsel %vm1004_vm3, 1, %v3314_v3 }
  0x22   :  { %2716 = vmatpush1.bf16.msra.mxu0 %v3472_v23  ;;  %303 = vperm.xlu0 %3202, %v301_v53   ;;  %v3572_v56 = vpack.c.bf16 %v106_v50, %v103_v48  ;;  %v102_v57 = vld [vmem:[%s4169_s2 + $0x120] sm:$0xff]  ;;  %v109_v59 = vld [vmem:[%s4169_s2 + $0x158] sm:$0xff]  ;;  %v3584_v60 = vpack.c.bf16 %v89_v52, %v86_v51  ;;  %v112_v61 = vld [vmem:[%s4169_s2 + $0x170] sm:$0xff]  ;;  %vm1356_vm4 = vcmp.gt.s32.totalorder %v3537_v44, 6  ;;  %v3694_v29 = vsub.s32 0, %v3691_v28 }
  0x23   :  { %2718 = vmatprep.subr.bf16.mxu0 %v3475_v24  ;;  %2742 = vmatpush3.bf16.msra.mxu1 %v3519_v39  ;;  %v92_v62 = vld [vmem:[%s4169_s2 + $0xd0] sm:$0xff]  ;;  %v95_v63 = vld [vmem:[%s4169_s2 + $0xe8] sm:$0xff]  ;;  %v3598_v0 = vpack.c.bf16 %v105_v58, %v102_v57  ;;  %v3602_v5 = vpack.c.bf16 %v112_v61, %v109_v59  ;;  %v98_v10 = vld [vmem:[%s4169_s2 + $0x100] sm:$0xff]  ;;  %v1357_v15 = vsel %vm1356_vm4, 1, %v3314_v3  ;;  %v3700_v32 = vsub.s32 1, %v3691_v28 }
  0x24   :  { %2743 = vmatprep.subr.bf16.mxu1 %v3311_v1  ;;  %v108_v6 = vld [vmem:[%s4169_s2 + $0x150] sm:$0xff]  ;;  %v111_v8 = vld [vmem:[%s4169_s2 + $0x168] sm:$0xff]  ;;  %v3611_v9 = vpack.c.bf16 %v95_v63, %v92_v62  ;;  %v101_v13 = vld [vmem:[%s4169_s2 + $0x118] sm:$0xff]  ;;  %v3714_v58 = vsub.s32 2, %v3691_v28  ;;  %vm652_vm6 = vcmp.gt.s32.totalorder %v3537_v44, 2  ;;  %vm828_vm7 = vcmp.gt.s32.totalorder %v3537_v44, 3 }
  0x25   :  { %v3622_v14 = vpack.c.bf16 %v111_v8, %v108_v6  ;;  %v3627_v16 = vpack.c.bf16 %v101_v13, %v98_v10  ;;  %v104_v19 = vld [vmem:[%s4169_s2 + $0x130] sm:$0xff]  ;;  %v107_v20 = vld [vmem:[%s4169_s2 + $0x148] sm:$0xff]  ;;  %v110_v22 = vld [vmem:[%s4169_s2 + $0x160] sm:$0xff]  ;;  %vm1180_vm8 = vcmp.gt.s32.totalorder %v3537_v44, 5  ;;  %vm1532_vm9 = vcmp.gt.s32.totalorder %v3537_v44, 7 }
  0x26   :  { %2720 = vmatpush1.bf16.msra.mxu0 %v3504_v34  ;;  %479 = vperm.xlu0 %3202, %v477_v55   ;;  %v3638_v21 = vpack.c.bf16 %v107_v20, %v104_v19  ;;  %v113_v25 = vld [vmem:[%s4169_s2 + $0x178] sm:$0xff]  ;;  %v114_v30 = vld [vmem:[%s4170_s3] sm:$0x7]  ;;  %vm1549_vm2 = vcmask 31744   ;;  %vm2139_vm4 = vcmask 7168  }
  0x27   :  { %2722 = vmatprep.subr.bf16.mxu0 %v3507_v35  ;;  %2745 = vmatpush3.bf16.msra.mxu1 %v3552_v49  ;;  %v3652_v26 = vpack.c.bf16 %v113_v25, %v110_v22  ;;  %v3703_v33 = vrot.slane %v114_v30, %v3694_v29  ;;  %v3706_v36 = vrot.slane %v114_v30, %v3700_v32  ;;  %v116_v37 = vld [vmem:[%s4167_s0] sm:$0x3f] }
  0x28   :  { %2746 = vmatprep.subr.bf16.mxu1 %v3311_v1  ;;  %v282_v46 = vrot.slane %v116_v37, 2  ;;  %v3717_v59 = vrot.slane %v114_v30, %v3714_v58 }
  0x2a   :  { %2724 = vmatpush1.bf16.msra.mxu0 %v3532_v43  ;;  %1007 = vperm.xlu0 %3202, %v1005_v4   ;;  %v292_v4 = vrot.slane %v116_v37, 4 }
  0x2b   :  { %2726 = vmatprep.subr.bf16.mxu0 %v3540_v45  ;;  %2748 = vmatpush3.bf16.msra.mxu1 %v3584_v60 }
  0x2c   :  { %2749 = vmatprep.subr.bf16.mxu1 %v3311_v1 }
  0x2e   :  { %2728 = vmatpush1.bf16.msra.mxu0 %v3568_v54  ;;  %1359 = vperm.xlu0 %3202, %v1357_v15  }
  0x2f   :  { %2730 = vmatprep.subr.bf16.mxu0 %v3572_v56  ;;  %2751 = vmatpush3.bf16.msra.mxu1 %v3611_v9 }
  0x30   :  { %2752 = vmatprep.subr.bf16.mxu1 %v3311_v1 }
  0x32   :  { %2732 = vmatpush1.bf16.msra.mxu0 %v3598_v0 }
  0x33   :  { %2734 = vmatprep.subr.bf16.mxu0 %v3602_v5  ;;  %2754 = vmatpush3.bf16.msra.mxu1 %v3627_v16 }
  0x34   :  { %2755 = vmatprep.subr.bf16.mxu1 %v3311_v1 }
  0x36   :  { %2736 = vmatpush1.bf16.msra.mxu0 %v3622_v14 }
  0x37   :  { %2762 = vmatprep.subr.bf16.mxu0 %v3425_v7  ;;  %2757 = vmatpush3.bf16.msra.mxu1 %v3638_v21 }
  0x38   :  { %2758 = vmatprep.subr.bf16.mxu1 %v3311_v1 }
  0x39   :  { %198 = vmatmul.mubr.f32.vlgmr.msra.gmra.mrb[0].mxu0 %v3312_v2 }
  0x3a   :  { %2764 = vmatpush1.bf16.msra.mxu0 %v3436_v11  ;;  %373 = vmatprep.mubr.f32.mxu0 %v3312_v2 }
  0x3b   :  { %2766 = vmatprep.subr.bf16.mxu0 %v3438_v12  ;;  %2760 = vmatpush3.bf16.msra.mxu1 %v3652_v26 }
  0x3c   :  { %2793 = vmatprep.subr.bf16.mxu1 %v3311_v1 }
  0x3e   :  { %2768 = vmatpush1.bf16.msra.mxu0 %v3454_v17  ;;  %2391 = vmatmul.mubr.f32.vlgmr.msra.gmra.mrb[0].mxu1 %v3312_v2 }
  0x3f   :  { %2770 = vmatprep.subr.bf16.mxu0 %v3457_v18  ;;  %2795 = vmatpush3.bf16.msra.mxu1 %v3495_v31 }
  0x40   :  { %2796 = vmatprep.subr.bf16.mxu1 %v3311_v1  ;;  %2425 = vmatprep.mubr.msk.f32.mxu1 %vm3313_vm0, %v3312_v2 }
  0x42   :  { %2772 = vmatpush1.bf16.msra.mxu0 %v3472_v23 }
  0x43   :  { %2774 = vmatprep.subr.bf16.mxu0 %v3475_v24  ;;  %2798 = vmatpush3.bf16.msra.mxu1 %v3519_v39 }
  0x44   :  { %2799 = vmatprep.subr.bf16.mxu1 %v3311_v1 }
  0x46   :  { %2776 = vmatpush1.bf16.msra.mxu0 %v3504_v34 }
  0x47   :  { %2778 = vmatprep.subr.bf16.mxu0 %v3507_v35  ;;  %2801 = vmatpush3.bf16.msra.mxu1 %v3552_v49 }
  0x48   :  { %2802 = vmatprep.subr.bf16.mxu1 %v3311_v1 }
  0x4a   :  { %2780 = vmatpush1.bf16.msra.mxu0 %v3532_v43 }
  0x4b   :  { %2782 = vmatprep.subr.bf16.mxu0 %v3540_v45  ;;  %2804 = vmatpush3.bf16.msra.mxu1 %v3584_v60 }
  0x4c   :  { %2805 = vmatprep.subr.bf16.mxu1 %v3311_v1 }
  0x4e   :  { %2784 = vmatpush1.bf16.msra.mxu0 %v3568_v54 }
  0x4f   :  { %2786 = vmatprep.subr.bf16.mxu0 %v3572_v56  ;;  %2807 = vmatpush3.bf16.msra.mxu1 %v3611_v9 }
  0x50   :  { %2808 = vmatprep.subr.bf16.mxu1 %v3311_v1 }
  0x52   :  { %2788 = vmatpush1.bf16.msra.mxu0 %v3598_v0 }
  0x53   :  { %2790 = vmatprep.subr.bf16.mxu0 %v3602_v5  ;;  %2810 = vmatpush3.bf16.msra.mxu1 %v3627_v16 }
  0x54   :  { %2811 = vmatprep.subr.bf16.mxu1 %v3311_v1 }
  0x56   :  { %2792 = vmatpush1.bf16.msra.mxu0 %v3622_v14 }
  0x57   :  { %2818 = vmatprep.subr.bf16.mxu0 %v3425_v7  ;;  %2813 = vmatpush3.bf16.msra.mxu1 %v3638_v21 }
  0x58   :  { %2814 = vmatprep.subr.bf16.mxu1 %v3311_v1 }
  0x5b   :  { %2816 = vmatpush3.bf16.msra.mxu1 %v3652_v26 }
  0x5c   :  { %2849 = vmatprep.subr.bf16.mxu1 %v3311_v1 }
  0xa1   :  { %v304_v20 = vpop.permute.xlu0 %303 }
  0xa2   :  { %vm305_vm5 = vcmp.eq.s32.totalorder %v304_v20, 1 }
 0x10c   :  { %v199_v38 = vpop.f32.mrb[0].mxu0 }
 0x10d   :  { %v200_v40 = vadd.f32 %v199_v38, %v3703_v33  ;;  %v201_v41 = vpop.f32.mrb[1].mxu0  ;;  %v829_v38 = vsel %vm828_vm7, 1, %v3314_v3 }
 0x10e   :  { %v202_v42 = vadd.f32 %v201_v41, %v3706_v36  ;;  %v1533_v41 = vsel %vm1532_vm9, 1, %v3314_v3 }
 0x10f   :  { %v274_v47 = vadd.f32 %v200_v40, %v116_v37  ;;  %v653_v37 = vsel %vm652_vm6, 1, %v3314_v3  ;;  %v1181_v40 = vsel %vm1180_vm8, 1, %v3314_v3 }
 0x110   :  { %v284_v50 = vadd.f32 %v282_v46, %v202_v42  ;;  %655 = vperm.xlu1 %3203, %v653_v37   ;;  %v2149_v42 = vld [vmem:[%s4167_s0 + $0x6] sm:$0x3f]  ;;  %v480_v37 = vpop.permute.xlu0 %479 }
 0x111   :  { %v2147_v48 = vmul.f32 -1.442695, %v274_v47  ;;  %v270_v51 = vpop.f32.mrb[0].mxu1  ;;  %vm481_vm10 = vcmp.eq.s32.totalorder %v480_v37, 1 }
 0x112   :  { %v2148_v52 = vmul.f32 -1.442695, %v284_v50  ;;  %v2392_v53 = vpop.f32.mrb[1].mxu1  ;;  %v271_v63 = vadd.f32 %v270_v51, %v3717_v59 }
 0x113   :  { %3204 = vpow2.f32 %v2147_v48  ;;  %v458_v48 = vrot.slane %v2149_v42, 2 }
 0x114   :  { %3206 = vpow2.f32 %v2148_v52  ;;  %831 = vperm.xlu1 %3203, %v829_v38  }
 0x118   :  { %1183 = vperm.xlu1 %3203, %v1181_v40  }
 0x11c   :  { %1535 = vperm.xlu1 %3203, %v1533_v41  }
 0x11d   :  { %v3205_v55 = vpop.eup %3204 }
 0x11e   :  { %v278_v57 = vadd.f32 1.0, %v3205_v55  ;;  %v3207_v61 = vpop.eup %3206 }
 0x11f   :  { %v288_v62 = vadd.f32 1.0, %v3207_v61 }
 0x120   :  { %3208 = vrcp.f32 %v278_v57 }
 0x121   :  { %3210 = vrcp.f32 %v288_v62 }
 0x12a   :  { %v3209_v6 = vpop.eup %3208 }
 0x12b   :  { %v291_v8 = vmul.f32 %v3209_v6, %v271_v63  ;;  %v3211_v13 = vpop.eup %3210 }
 0x12c   :  { %v296_v15 = vsub.f32 1.0, %v3211_v13  ;;  %v298_v25 = vmul.f32 0.0, %v3211_v13 }
 0x12d   :  { %v294_v10 = vadd.f32 %v292_v4, %v291_v8  ;;  %v468_v8 = vrot.slane %v2149_v42, 4 }
 0x12f   :  { %3212 = vtanh.f32 %v294_v10 }
 0x139   :  { %v3213_v19 = vpop.eup %3212 }
 0x13a   :  { %v297_v22 = vmul.f32 %v3213_v19, %v296_v15 }
 0x13c   :  { %v299_v27 = vadd.f32 %v298_v25, %v297_v22 }
 0x13e   :  { %v3720_v30 = vsel %vm305_vm5, %v299_v27, 0.0  ;;  %2150 = vmatmul.mubr.msk.f32.vlgmr.msra.gmra.mrb[2].mxu0 %vm305_vm5, %v299_v27  ;;  %2426 = vmatmul.mubr.msk.f32.vlgmr.msra.gmra.mrb[2].mxu1 %vm305_vm5, %v299_v27 }
 0x13f   :  { %2820 = vmatpush1.bf16.msra.mxu0 %v3436_v11  ;;  %2851 = vmatpush3.bf16.msra.mxu1 %v3495_v31 }
 0x140   :  { %2822 = vmatprep.subr.bf16.mxu0 %v3438_v12  ;;  %2852 = vmatprep.subr.bf16.mxu1 %v3311_v1 }
 0x141   :  { %549 = vmatprep.mubr.f32.mxu0 %v3312_v2  ;;  %2460 = vmatprep.mubr.msk.f32.mxu1 %vm3313_vm0, %v3312_v2 }
 0x143   :  { %2824 = vmatpush1.bf16.msra.mxu0 %v3454_v17  ;;  %2854 = vmatpush3.bf16.msra.mxu1 %v3519_v39 }
 0x144   :  { %2826 = vmatprep.subr.bf16.mxu0 %v3457_v18  ;;  %2855 = vmatprep.subr.bf16.mxu1 %v3311_v1 }
 0x147   :  { %2828 = vmatpush1.bf16.msra.mxu0 %v3472_v23  ;;  %2857 = vmatpush3.bf16.msra.mxu1 %v3552_v49 }
 0x148   :  { %2830 = vmatprep.subr.bf16.mxu0 %v3475_v24  ;;  %2858 = vmatprep.subr.bf16.mxu1 %v3311_v1 }
 0x14b   :  { %2832 = vmatpush1.bf16.msra.mxu0 %v3504_v34  ;;  %2860 = vmatpush3.bf16.msra.mxu1 %v3584_v60 }
 0x14c   :  { %2834 = vmatprep.subr.bf16.mxu0 %v3507_v35  ;;  %2861 = vmatprep.subr.bf16.mxu1 %v3311_v1 }
 0x14f   :  { %2836 = vmatpush1.bf16.msra.mxu0 %v3532_v43  ;;  %2863 = vmatpush3.bf16.msra.mxu1 %v3611_v9 }
 0x150   :  { %2838 = vmatprep.subr.bf16.mxu0 %v3540_v45  ;;  %2864 = vmatprep.subr.bf16.mxu1 %v3311_v1 }
 0x153   :  { %2840 = vmatpush1.bf16.msra.mxu0 %v3568_v54  ;;  %2866 = vmatpush3.bf16.msra.mxu1 %v3627_v16 }
 0x154   :  { %2842 = vmatprep.subr.bf16.mxu0 %v3572_v56  ;;  %2867 = vmatprep.subr.bf16.mxu1 %v3311_v1 }
 0x157   :  { %2844 = vmatpush1.bf16.msra.mxu0 %v3598_v0  ;;  %2869 = vmatpush3.bf16.msra.mxu1 %v3638_v21 }
 0x158   :  { %2846 = vmatprep.subr.bf16.mxu0 %v3602_v5  ;;  %2870 = vmatprep.subr.bf16.mxu1 %v3311_v1 }
 0x15b   :  { %2848 = vmatpush1.bf16.msra.mxu0 %v3622_v14  ;;  %2872 = vmatpush3.bf16.msra.mxu1 %v3652_v26 }
 0x15c   :  { %2874 = vmatprep.subr.bf16.mxu0 %v3425_v7  ;;  %2905 = vmatprep.subr.bf16.mxu1 %v3311_v1 }
 0x211   :  { %v375_v46 = vpop.f32.mrb[2].mxu0  ;;  %v446_v47 = vpop.f32.mrb[2].mxu1 }
 0x212   :  { %v376_v50 = vadd.f32 %v375_v46, %v3703_v33  ;;  %v377_v51 = vpop.f32.mrb[3].mxu0  ;;  %v2427_v52 = vpop.f32.mrb[3].mxu1  ;;  %v447_v6 = vadd.f32 %v446_v47, %v3717_v59 }
 0x213   :  { %v378_v53 = vadd.f32 %v377_v51, %v3706_v36 }
 0x214   :  { %v450_v55 = vadd.f32 %v2149_v42, %v376_v50 }
 0x215   :  { %v460_v57 = vadd.f32 %v458_v48, %v378_v53 }
 0x216   :  { %v2152_v44 = vmul.f32 -1.442695, %v450_v55 }
 0x217   :  { %v2153_v61 = vmul.f32 -1.442695, %v460_v57 }
 0x218   :  { %3214 = vpow2.f32 %v2152_v44 }
 0x219   :  { %3216 = vpow2.f32 %v2153_v61 }
 0x222   :  { %v3215_v3 = vpop.eup %3214 }
 0x223   :  { %v3217_v62 = vpop.eup %3216  ;;  %v454_v63 = vadd.f32 1.0, %v3215_v3 }
 0x224   :  { %v464_v4 = vadd.f32 1.0, %v3217_v62 }
 0x225   :  { %3218 = vrcp.f32 %v454_v63 }
 0x226   :  { %3220 = vrcp.f32 %v464_v4 }
 0x22f   :  { %v3219_v10 = vpop.eup %3218 }
 0x230   :  { %v3221_v13 = vpop.eup %3220  ;;  %v467_v15 = vmul.f32 %v3219_v10, %v447_v6 }
 0x231   :  { %v474_v19 = vmul.f32 %v3221_v13, %v3720_v30  ;;  %v472_v22 = vsub.f32 1.0, %v3221_v13 }
 0x232   :  { %v470_v20 = vadd.f32 %v468_v8, %v467_v15 }
 0x234   :  { %3222 = vtanh.f32 %v470_v20  ;;  %v656_v20 = vpop.permute.xlu1 %655 }
 0x235   :  { %vm657_vm11 = vcmp.eq.s32.totalorder %v656_v20, 1 }
 0x238   :  { %v832_v20 = vpop.permute.xlu1 %831 }
 0x239   :  { %vm833_vm12 = vcmp.eq.s32.totalorder %v832_v20, 1 }
 0x23e   :  { %v3223_v25 = vpop.eup %3222 }
 0x23f   :  { %v473_v27 = vmul.f32 %v3223_v25, %v472_v22 }
 0x241   :  { %v475_v38 = vadd.f32 %v474_v19, %v473_v27 }
 0x243   :  { %v3773_v40 = vsel %vm481_vm10, %v475_v38, %v3720_v30  ;;  %v2154_v30 = vld [vmem:[%s4167_s0 + $0xc] sm:$0x3f]  ;;  %v2157_v38 = vld [vmem:[%s4167_s0 + $0x12] sm:$0x3f] }
 0x244   :  { %550 = vmatmul.mubr.f32.vlgmr.msra.gmra.mrb[4].mxu0 %v3773_v40  ;;  %2461 = vmatmul.mubr.f32.vlgmr.msra.gmra.mrb[4].mxu1 %v3773_v40  ;;  %v634_v51 = vrot.slane %v2154_v30, 2  ;;  %v644_v4 = vrot.slane %v2154_v30, 4 }
 0x245   :  { %2876 = vmatpush1.bf16.msra.mxu0 %v3436_v11  ;;  %2907 = vmatpush3.bf16.msra.mxu1 %v3495_v31 }
 0x246   :  { %2878 = vmatprep.subr.bf16.mxu0 %v3438_v12  ;;  %2908 = vmatprep.subr.bf16.mxu1 %v3311_v1 }
 0x247   :  { %725 = vmatprep.mubr.f32.mxu0 %v3312_v2  ;;  %2495 = vmatprep.mubr.msk.f32.mxu1 %vm3313_vm0, %v3312_v2 }
 0x249   :  { %2880 = vmatpush1.bf16.msra.mxu0 %v3454_v17  ;;  %2910 = vmatpush3.bf16.msra.mxu1 %v3519_v39 }
 0x24a   :  { %2882 = vmatprep.subr.bf16.mxu0 %v3457_v18  ;;  %2911 = vmatprep.subr.bf16.mxu1 %v3311_v1 }
 0x24d   :  { %2884 = vmatpush1.bf16.msra.mxu0 %v3472_v23  ;;  %2913 = vmatpush3.bf16.msra.mxu1 %v3552_v49 }
 0x24e   :  { %2886 = vmatprep.subr.bf16.mxu0 %v3475_v24  ;;  %2914 = vmatprep.subr.bf16.mxu1 %v3311_v1 }
 0x251   :  { %2888 = vmatpush1.bf16.msra.mxu0 %v3504_v34  ;;  %2916 = vmatpush3.bf16.msra.mxu1 %v3584_v60 }
 0x252   :  { %2890 = vmatprep.subr.bf16.mxu0 %v3507_v35  ;;  %2917 = vmatprep.subr.bf16.mxu1 %v3311_v1 }
 0x255   :  { %2892 = vmatpush1.bf16.msra.mxu0 %v3532_v43  ;;  %2919 = vmatpush3.bf16.msra.mxu1 %v3611_v9 }
 0x256   :  { %2894 = vmatprep.subr.bf16.mxu0 %v3540_v45  ;;  %2920 = vmatprep.subr.bf16.mxu1 %v3311_v1 }
 0x259   :  { %2896 = vmatpush1.bf16.msra.mxu0 %v3568_v54  ;;  %2922 = vmatpush3.bf16.msra.mxu1 %v3627_v16 }
 0x25a   :  { %2898 = vmatprep.subr.bf16.mxu0 %v3572_v56  ;;  %2923 = vmatprep.subr.bf16.mxu1 %v3311_v1 }
 0x25d   :  { %2900 = vmatpush1.bf16.msra.mxu0 %v3598_v0  ;;  %2925 = vmatpush3.bf16.msra.mxu1 %v3638_v21 }
 0x25e   :  { %2902 = vmatprep.subr.bf16.mxu0 %v3602_v5  ;;  %2926 = vmatprep.subr.bf16.mxu1 %v3311_v1 }
 0x261   :  { %2904 = vmatpush1.bf16.msra.mxu0 %v3622_v14  ;;  %2928 = vmatpush3.bf16.msra.mxu1 %v3652_v26 }
 0x262   :  { %2930 = vmatprep.subr.bf16.mxu0 %v3425_v7  ;;  %2961 = vmatprep.subr.bf16.mxu1 %v3311_v1 }
 0x317   :  { %v551_v41 = vpop.f32.mrb[4].mxu0  ;;  %v622_v42 = vpop.f32.mrb[4].mxu1 }
 0x318   :  { %v552_v46 = vadd.f32 %v551_v41, %v3703_v33  ;;  %v553_v47 = vpop.f32.mrb[5].mxu0  ;;  %v2462_v48 = vpop.f32.mrb[5].mxu1  ;;  %v623_v63 = vadd.f32 %v622_v42, %v3717_v59 }
 0x319   :  { %v554_v50 = vadd.f32 %v553_v47, %v3706_v36  ;;  %v810_v48 = vrot.slane %v2157_v38, 2 }
 0x31a   :  { %v626_v52 = vadd.f32 %v2154_v30, %v552_v46 }
 0x31b   :  { %v636_v55 = vadd.f32 %v634_v51, %v554_v50 }
 0x31c   :  { %v2155_v53 = vmul.f32 -1.442695, %v626_v52 }
 0x31d   :  { %v2156_v57 = vmul.f32 -1.442695, %v636_v55 }
 0x31e   :  { %3224 = vpow2.f32 %v2155_v53 }
 0x31f   :  { %3226 = vpow2.f32 %v2156_v57 }
 0x328   :  { %v3225_v44 = vpop.eup %3224 }
 0x329   :  { %v630_v61 = vadd.f32 1.0, %v3225_v44  ;;  %v3227_v3 = vpop.eup %3226 }
 0x32a   :  { %v640_v62 = vadd.f32 1.0, %v3227_v3 }
 0x32b   :  { %3228 = vrcp.f32 %v630_v61 }
 0x32c   :  { %3230 = vrcp.f32 %v640_v62  ;;  %v820_v62 = vrot.slane %v2157_v38, 4 }
 0x335   :  { %v3229_v6 = vpop.eup %3228 }
 0x336   :  { %v643_v8 = vmul.f32 %v3229_v6, %v623_v63  ;;  %v3231_v13 = vpop.eup %3230 }
 0x337   :  { %v648_v15 = vsub.f32 1.0, %v3231_v13  ;;  %v650_v25 = vmul.f32 %v3231_v13, %v3773_v40 }
 0x338   :  { %v646_v10 = vadd.f32 %v644_v4, %v643_v8 }
 0x33a   :  { %3232 = vtanh.f32 %v646_v10 }
 0x344   :  { %v3233_v19 = vpop.eup %3232 }
 0x345   :  { %v649_v22 = vmul.f32 %v3233_v19, %v648_v15 }
 0x347   :  { %v651_v27 = vadd.f32 %v650_v25, %v649_v22 }
 0x349   :  { %v3820_v37 = vsel %vm657_vm11, %v651_v27, %v3773_v40  ;;  %v2160_v27 = vld [vmem:[%s4167_s0 + $0x18] sm:$0x3f] }
 0x34a   :  { %726 = vmatmul.mubr.f32.vlgmr.msra.gmra.mrb[6].mxu0 %v3820_v37  ;;  %2496 = vmatmul.mubr.f32.vlgmr.msra.gmra.mrb[6].mxu1 %v3820_v37 }
 0x34b   :  { %2932 = vmatpush1.bf16.msra.mxu0 %v3436_v11  ;;  %2963 = vmatpush3.bf16.msra.mxu1 %v3495_v31 }
 0x34c   :  { %2934 = vmatprep.subr.bf16.mxu0 %v3438_v12  ;;  %2964 = vmatprep.subr.bf16.mxu1 %v3311_v1 }
 0x34d   :  { %901 = vmatprep.mubr.f32.mxu0 %v3312_v2  ;;  %2530 = vmatprep.mubr.msk.f32.mxu1 %vm3313_vm0, %v3312_v2 }
 0x34f   :  { %2936 = vmatpush1.bf16.msra.mxu0 %v3454_v17  ;;  %2966 = vmatpush3.bf16.msra.mxu1 %v3519_v39 }
 0x350   :  { %2938 = vmatprep.subr.bf16.mxu0 %v3457_v18  ;;  %2967 = vmatprep.subr.bf16.mxu1 %v3311_v1 }
 0x353   :  { %2940 = vmatpush1.bf16.msra.mxu0 %v3472_v23  ;;  %2969 = vmatpush3.bf16.msra.mxu1 %v3552_v49 }
 0x354   :  { %2942 = vmatprep.subr.bf16.mxu0 %v3475_v24  ;;  %2970 = vmatprep.subr.bf16.mxu1 %v3311_v1 }
 0x357   :  { %2944 = vmatpush1.bf16.msra.mxu0 %v3504_v34  ;;  %2972 = vmatpush3.bf16.msra.mxu1 %v3584_v60 }
 0x358   :  { %2946 = vmatprep.subr.bf16.mxu0 %v3507_v35  ;;  %2973 = vmatprep.subr.bf16.mxu1 %v3311_v1 }
 0x35b   :  { %2948 = vmatpush1.bf16.msra.mxu0 %v3532_v43  ;;  %2975 = vmatpush3.bf16.msra.mxu1 %v3611_v9 }
 0x35c   :  { %2950 = vmatprep.subr.bf16.mxu0 %v3540_v45  ;;  %2976 = vmatprep.subr.bf16.mxu1 %v3311_v1 }
 0x35f   :  { %2952 = vmatpush1.bf16.msra.mxu0 %v3568_v54  ;;  %2978 = vmatpush3.bf16.msra.mxu1 %v3627_v16 }
 0x360   :  { %2954 = vmatprep.subr.bf16.mxu0 %v3572_v56  ;;  %2979 = vmatprep.subr.bf16.mxu1 %v3311_v1 }
 0x363   :  { %2956 = vmatpush1.bf16.msra.mxu0 %v3598_v0  ;;  %2981 = vmatpush3.bf16.msra.mxu1 %v3638_v21 }
 0x364   :  { %2958 = vmatprep.subr.bf16.mxu0 %v3602_v5  ;;  %2982 = vmatprep.subr.bf16.mxu1 %v3311_v1 }
 0x367   :  { %2960 = vmatpush1.bf16.msra.mxu0 %v3622_v14  ;;  %2984 = vmatpush3.bf16.msra.mxu1 %v3652_v26 }
 0x368   :  { %2986 = vmatprep.subr.bf16.mxu0 %v3425_v7  ;;  %3017 = vmatprep.subr.bf16.mxu1 %v3311_v1 }
 0x41d   :  { %v727_v40 = vpop.f32.mrb[6].mxu0  ;;  %v798_v30 = vpop.f32.mrb[6].mxu1 }
 0x41e   :  { %v728_v41 = vadd.f32 %v727_v40, %v3703_v33  ;;  %v729_v42 = vpop.f32.mrb[7].mxu0  ;;  %v2497_v46 = vpop.f32.mrb[7].mxu1  ;;  %v799_v3 = vadd.f32 %v798_v30, %v3717_v59 }
 0x41f   :  { %v730_v47 = vadd.f32 %v729_v42, %v3706_v36  ;;  %v986_v46 = vrot.slane %v2160_v27, 2 }
 0x420   :  { %v802_v50 = vadd.f32 %v2157_v38, %v728_v41 }
 0x421   :  { %v812_v52 = vadd.f32 %v810_v48, %v730_v47 }
 0x422   :  { %v2158_v51 = vmul.f32 -1.442695, %v802_v50 }
 0x423   :  { %v2159_v53 = vmul.f32 -1.442695, %v812_v52 }
 0x424   :  { %3234 = vpow2.f32 %v2158_v51 }
 0x425   :  { %3236 = vpow2.f32 %v2159_v53 }
 0x42e   :  { %v3235_v55 = vpop.eup %3234 }
 0x42f   :  { %v806_v57 = vadd.f32 1.0, %v3235_v55  ;;  %v3237_v44 = vpop.eup %3236 }
 0x430   :  { %v816_v61 = vadd.f32 1.0, %v3237_v44 }
 0x431   :  { %3238 = vrcp.f32 %v806_v57 }
 0x432   :  { %3240 = vrcp.f32 %v816_v61  ;;  %v996_v61 = vrot.slane %v2160_v27, 4 }
 0x43b   :  { %v3239_v63 = vpop.eup %3238 }
 0x43c   :  { %v819_v4 = vmul.f32 %v3239_v63, %v799_v3  ;;  %v3241_v8 = vpop.eup %3240 }
 0x43d   :  { %v824_v10 = vsub.f32 1.0, %v3241_v8  ;;  %v826_v19 = vmul.f32 %v3241_v8, %v3820_v37 }
 0x43e   :  { %v822_v6 = vadd.f32 %v820_v62, %v819_v4 }
 0x440   :  { %3242 = vtanh.f32 %v822_v6 }
 0x44a   :  { %v3243_v13 = vpop.eup %3242 }
 0x44b   :  { %v825_v15 = vmul.f32 %v3243_v13, %v824_v10 }
 0x44d   :  { %v827_v22 = vadd.f32 %v826_v19, %v825_v15  ;;  %v1008_v15 = vpop.permute.xlu0 %1007 }
 0x44e   :  { %vm1009_vm13 = vcmp.eq.s32.totalorder %v1008_v15, 1 }
 0x44f   :  { %v3867_v25 = vsel %vm833_vm12, %v827_v22, %v3820_v37  ;;  %v2163_v22 = vld [vmem:[%s4167_s0 + $0x1e] sm:$0x3f] }
 0x450   :  { %902 = vmatmul.mubr.f32.vlgmr.msra.gmra.mrb[8].mxu0 %v3867_v25  ;;  %2531 = vmatmul.mubr.f32.vlgmr.msra.gmra.mrb[8].mxu1 %v3867_v25 }
 0x451   :  { %2988 = vmatpush1.bf16.msra.mxu0 %v3436_v11  ;;  %3019 = vmatpush3.bf16.msra.mxu1 %v3495_v31 }
 0x452   :  { %2990 = vmatprep.subr.bf16.mxu0 %v3438_v12  ;;  %3020 = vmatprep.subr.bf16.mxu1 %v3311_v1 }
 0x453   :  { %1077 = vmatprep.mubr.f32.mxu0 %v3312_v2  ;;  %2565 = vmatprep.mubr.msk.f32.mxu1 %vm3313_vm0, %v3312_v2 }
 0x455   :  { %2992 = vmatpush1.bf16.msra.mxu0 %v3454_v17  ;;  %3022 = vmatpush3.bf16.msra.mxu1 %v3519_v39 }
 0x456   :  { %2994 = vmatprep.subr.bf16.mxu0 %v3457_v18  ;;  %3023 = vmatprep.subr.bf16.mxu1 %v3311_v1 }
 0x459   :  { %2996 = vmatpush1.bf16.msra.mxu0 %v3472_v23  ;;  %3025 = vmatpush3.bf16.msra.mxu1 %v3552_v49 }
 0x45a   :  { %2998 = vmatprep.subr.bf16.mxu0 %v3475_v24  ;;  %3026 = vmatprep.subr.bf16.mxu1 %v3311_v1 }
 0x45d   :  { %3000 = vmatpush1.bf16.msra.mxu0 %v3504_v34  ;;  %3028 = vmatpush3.bf16.msra.mxu1 %v3584_v60 }
 0x45e   :  { %3002 = vmatprep.subr.bf16.mxu0 %v3507_v35  ;;  %3029 = vmatprep.subr.bf16.mxu1 %v3311_v1 }
 0x461   :  { %3004 = vmatpush1.bf16.msra.mxu0 %v3532_v43  ;;  %3031 = vmatpush3.bf16.msra.mxu1 %v3611_v9 }
 0x462   :  { %3006 = vmatprep.subr.bf16.mxu0 %v3540_v45  ;;  %3032 = vmatprep.subr.bf16.mxu1 %v3311_v1 }
 0x465   :  { %3008 = vmatpush1.bf16.msra.mxu0 %v3568_v54  ;;  %3034 = vmatpush3.bf16.msra.mxu1 %v3627_v16 }
 0x466   :  { %3010 = vmatprep.subr.bf16.mxu0 %v3572_v56  ;;  %3035 = vmatprep.subr.bf16.mxu1 %v3311_v1 }
 0x469   :  { %3012 = vmatpush1.bf16.msra.mxu0 %v3598_v0  ;;  %3037 = vmatpush3.bf16.msra.mxu1 %v3638_v21 }
 0x46a   :  { %3014 = vmatprep.subr.bf16.mxu0 %v3602_v5  ;;  %3038 = vmatprep.subr.bf16.mxu1 %v3311_v1 }
 0x46d   :  { %3016 = vmatpush1.bf16.msra.mxu0 %v3622_v14  ;;  %3040 = vmatpush3.bf16.msra.mxu1 %v3652_v26 }
 0x46e   :  { %3042 = vmatprep.subr.bf16.mxu0 %v3425_v7  ;;  %3073 = vmatprep.subr.bf16.mxu1 %v3311_v1 }
 0x523   :  { %v903_v37 = vpop.f32.mrb[8].mxu0  ;;  %v974_v38 = vpop.f32.mrb[8].mxu1 }
 0x524   :  { %v904_v40 = vadd.f32 %v903_v37, %v3703_v33  ;;  %v905_v30 = vpop.f32.mrb[9].mxu0  ;;  %v2532_v41 = vpop.f32.mrb[9].mxu1  ;;  %v975_v44 = vadd.f32 %v974_v38, %v3717_v59 }
 0x525   :  { %v906_v42 = vadd.f32 %v905_v30, %v3706_v36  ;;  %v1162_v41 = vrot.slane %v2163_v22, 2 }
 0x526   :  { %v978_v47 = vadd.f32 %v2160_v27, %v904_v40 }
 0x527   :  { %v988_v50 = vadd.f32 %v986_v46, %v906_v42 }
 0x528   :  { %v2161_v48 = vmul.f32 -1.442695, %v978_v47 }
 0x529   :  { %v2162_v51 = vmul.f32 -1.442695, %v988_v50 }
 0x52a   :  { %3244 = vpow2.f32 %v2161_v48 }
 0x52b   :  { %3246 = vpow2.f32 %v2162_v51 }
 0x534   :  { %v3245_v52 = vpop.eup %3244 }
 0x535   :  { %v982_v53 = vadd.f32 1.0, %v3245_v52  ;;  %v3247_v55 = vpop.eup %3246 }
 0x536   :  { %v992_v57 = vadd.f32 1.0, %v3247_v55  ;;  %v1172_v55 = vrot.slane %v2163_v22, 4 }
 0x537   :  { %3248 = vrcp.f32 %v982_v53 }
 0x538   :  { %3250 = vrcp.f32 %v992_v57 }
 0x541   :  { %v3249_v3 = vpop.eup %3248 }
 0x542   :  { %v995_v62 = vmul.f32 %v3249_v3, %v975_v44  ;;  %v3251_v4 = vpop.eup %3250 }
 0x543   :  { %v1000_v6 = vsub.f32 1.0, %v3251_v4  ;;  %v1002_v13 = vmul.f32 %v3251_v4, %v3867_v25 }
 0x544   :  { %v998_v63 = vadd.f32 %v996_v61, %v995_v62 }
 0x546   :  { %3252 = vtanh.f32 %v998_v63 }
 0x550   :  { %v3253_v8 = vpop.eup %3252 }
 0x551   :  { %v1001_v10 = vmul.f32 %v3253_v8, %v1000_v6  ;;  %v1184_v8 = vpop.permute.xlu1 %1183 }
 0x552   :  { %vm1185_vm14 = vcmp.eq.s32.totalorder %v1184_v8, 1 }
 0x553   :  { %v1003_v19 = vadd.f32 %v1002_v13, %v1001_v10 }
 0x555   :  { %v3914_v20 = vsel %vm1009_vm13, %v1003_v19, %v3867_v25 }
 0x556   :  { %1078 = vmatmul.mubr.f32.vlgmr.msra.gmra.mrb[10].mxu0 %v3914_v20  ;;  %2566 = vmatmul.mubr.f32.vlgmr.msra.gmra.mrb[10].mxu1 %v3914_v20 }
 0x557   :  { %3044 = vmatpush1.bf16.msra.mxu0 %v3436_v11  ;;  %3075 = vmatpush3.bf16.msra.mxu1 %v3495_v31 }
 0x558   :  { %3046 = vmatprep.subr.bf16.mxu0 %v3438_v12  ;;  %3076 = vmatprep.subr.bf16.mxu1 %v3311_v1 }
 0x559   :  { %1253 = vmatprep.mubr.f32.mxu0 %v3312_v2  ;;  %2600 = vmatprep.mubr.msk.f32.mxu1 %vm3313_vm0, %v3312_v2 }
 0x55b   :  { %3048 = vmatpush1.bf16.msra.mxu0 %v3454_v17  ;;  %3078 = vmatpush3.bf16.msra.mxu1 %v3519_v39 }
 0x55c   :  { %3050 = vmatprep.subr.bf16.mxu0 %v3457_v18  ;;  %3079 = vmatprep.subr.bf16.mxu1 %v3311_v1 }
 0x55f   :  { %3052 = vmatpush1.bf16.msra.mxu0 %v3472_v23  ;;  %3081 = vmatpush3.bf16.msra.mxu1 %v3552_v49 }
 0x560   :  { %3054 = vmatprep.subr.bf16.mxu0 %v3475_v24  ;;  %3082 = vmatprep.subr.bf16.mxu1 %v3311_v1 }
 0x563   :  { %3056 = vmatpush1.bf16.msra.mxu0 %v3504_v34  ;;  %3084 = vmatpush3.bf16.msra.mxu1 %v3584_v60 }
 0x564   :  { %3058 = vmatprep.subr.bf16.mxu0 %v3507_v35  ;;  %3085 = vmatprep.subr.bf16.mxu1 %v3311_v1 }
 0x567   :  { %3060 = vmatpush1.bf16.msra.mxu0 %v3532_v43  ;;  %3087 = vmatpush3.bf16.msra.mxu1 %v3611_v9 }
 0x568   :  { %3062 = vmatprep.subr.bf16.mxu0 %v3540_v45  ;;  %3088 = vmatprep.subr.bf16.mxu1 %v3311_v1 }
 0x56b   :  { %3064 = vmatpush1.bf16.msra.mxu0 %v3568_v54  ;;  %3090 = vmatpush3.bf16.msra.mxu1 %v3627_v16 }
 0x56c   :  { %3066 = vmatprep.subr.bf16.mxu0 %v3572_v56  ;;  %3091 = vmatprep.subr.bf16.mxu1 %v3311_v1 }
 0x56f   :  { %3068 = vmatpush1.bf16.msra.mxu0 %v3598_v0  ;;  %3093 = vmatpush3.bf16.msra.mxu1 %v3638_v21 }
 0x570   :  { %3070 = vmatprep.subr.bf16.mxu0 %v3602_v5  ;;  %3094 = vmatprep.subr.bf16.mxu1 %v3311_v1 }
 0x573   :  { %3072 = vmatpush1.bf16.msra.mxu0 %v3622_v14  ;;  %3096 = vmatpush3.bf16.msra.mxu1 %v3652_v26 }
 0x574   :  { %3098 = vmatprep.subr.bf16.mxu0 %v3425_v7  ;;  %3129 = vmatprep.subr.bf16.mxu1 %v3311_v1 }
 0x629   :  { %v1079_v25 = vpop.f32.mrb[10].mxu0  ;;  %v1150_v27 = vpop.f32.mrb[10].mxu1 }
 0x62a   :  { %v1080_v37 = vadd.f32 %v1079_v25, %v3703_v33  ;;  %v1081_v38 = vpop.f32.mrb[11].mxu0  ;;  %v2567_v40 = vpop.f32.mrb[11].mxu1  ;;  %v1151_v53 = vadd.f32 %v1150_v27, %v3717_v59 }
 0x62b   :  { %v1082_v30 = vadd.f32 %v1081_v38, %v3706_v36  ;;  %v1637_v40 = vld [vmem:[%s4174_s7] sm:$0xf] }
 0x62c   :  { %v1154_v42 = vadd.f32 %v2163_v22, %v1080_v37  ;;  %v1539_v37 = vld [vmem:[%s4171_s4] sm:$0xff] }
 0x62d   :  { %v1164_v47 = vadd.f32 %v1162_v41, %v1082_v30  ;;  %v1540_v30 = vld [vmem:[%s4171_s4 + $0x8] sm:$0xff]  ;;  %v1839_v41 = vld [vmem:[%s4178_s11] sm:$0xff] }
 0x62e   :  { %v2164_v46 = vmul.f32 -1.442695, %v1154_v42  ;;  %v1840_v42 = vld [vmem:[%s4178_s11 + $0x8] sm:$0xff] }
 0x62f   :  { %v2165_v7 = vmul.f32 -1.442695, %v1164_v47  ;;  %v1842_v47 = vld [vmem:[%s4178_s11 + $0x18] sm:$0xff] }
 0x630   :  { %3254 = vpow2.f32 %v2164_v46  ;;  %v3154_v46 = vpack.c.bf16 %v1840_v42, %v1839_v41 }
 0x631   :  { %3256 = vpow2.f32 %v2165_v7 }
 0x63a   :  { %v3255_v48 = vpop.eup %3254 }
 0x63b   :  { %v1158_v50 = vadd.f32 1.0, %v3255_v48  ;;  %v3257_v51 = vpop.eup %3256  ;;  %v1937_v48 = vld [vmem:[#allocation3] sm:$0xff] }
 0x63c   :  { %v1168_v52 = vadd.f32 1.0, %v3257_v51 }
 0x63d   :  { %3258 = vrcp.f32 %v1158_v50  ;;  %v1938_v50 = vld [vmem:[#allocation3 + $0x8] sm:$0xff] }
 0x63e   :  { %3260 = vrcp.f32 %v1168_v52  ;;  %v3177_v51 = vpack.c.bf16 %v1938_v50, %v1937_v48  ;;  %v1843_v52 = vld [vmem:[%s4178_s11 + $0x20] sm:$0xff] }
 0x647   :  { %v3259_v57 = vpop.eup %3258 }
 0x648   :  { %v1171_v44 = vmul.f32 %v3259_v57, %v1151_v53  ;;  %v3261_v3 = vpop.eup %3260  ;;  %v1844_v53 = vld [vmem:[%s4178_s11 + $0x28] sm:$0xff]  ;;  %v1939_v57 = vld [vmem:[#allocation3 + $0x10] sm:$0xff] }
 0x649   :  { %v1176_v62 = vsub.f32 1.0, %v3261_v3  ;;  %v1178_v6 = vmul.f32 %v3261_v3, %v3914_v20  ;;  %v1845_v3 = vld [vmem:[%s4178_s11 + $0x30] sm:$0xff] }
 0x64a   :  { %v1174_v61 = vadd.f32 %v1172_v55, %v1171_v44  ;;  %v3160_v55 = vpack.c.bf16 %v1844_v53, %v1843_v52  ;;  %v1940_v44 = vld [vmem:[#allocation3 + $0x18] sm:$0xff] }
 0x64c   :  { %3262 = vtanh.f32 %v1174_v61  ;;  %v3181_v61 = vpack.c.bf16 %v1940_v44, %v1939_v57 }
 0x656   :  { %v3263_v63 = vpop.eup %3262 }
 0x657   :  { %v1177_v4 = vmul.f32 %v3263_v63, %v1176_v62  ;;  %v1846_v62 = vld [vmem:[%s4178_s11 + $0x38] sm:$0xff] }
 0x658   :  { %v3163_v63 = vpack.c.bf16 %v1846_v62, %v1845_v3 }
 0x659   :  { %v1179_v10 = vadd.f32 %v1178_v6, %v1177_v4  ;;  %v1933_v4 = vld [vmem:[%s4176_s9] sm:$0xff]  ;;  %v1934_v6 = vld [vmem:[%s4176_s9 + $0x8] sm:$0xff] }
 0x65a   :  { %v4063_v8 = vpack.c.bf16 %v1934_v6, %v1933_v4 }
 0x65b   :  { %v3961_v13 = vsel %vm1185_vm14, %v1179_v10, %v3914_v20  ;;  %v1360_v20 = vpop.permute.xlu0 %1359  ;;  %v1847_v10 = vld [vmem:[%s4178_s11 + $0x40] sm:$0xff] }
 0x65c   :  { %1254 = vmatmul.mubr.f32.vlgmr.msra.gmra.mrb[12].mxu0 %v3961_v13  ;;  %2601 = vmatmul.mubr.f32.vlgmr.msra.gmra.mrb[12].mxu1 %v3961_v13  ;;  %vm1361_vm1 = vcmp.eq.s32.totalorder %v1360_v20, 1 }
 0x65d   :  { %3100 = vmatpush1.bf16.msra.mxu0 %v3436_v11  ;;  %3131 = vmatpush3.bf16.msra.mxu1 %v3495_v31  ;;  %v1541_v11 = vld [vmem:[%s4172_s5] sm:$0xf] }
 0x65e   :  { %3102 = vmatprep.subr.bf16.mxu0 %v3438_v12  ;;  %3132 = vmatprep.subr.bf16.mxu1 %v3311_v1  ;;  %v2166_v12 = vld [vmem:[%s4167_s0 + $0x24] sm:$0x3f] }
 0x65f   :  { %1429 = vmatprep.mubr.f32.mxu0 %v3312_v2  ;;  %2635 = vmatprep.mubr.msk.f32.mxu1 %vm3313_vm0, %v3312_v2 }
 0x661   :  { %3104 = vmatpush1.bf16.msra.mxu0 %v3454_v17  ;;  %3134 = vmatpush3.bf16.msra.mxu1 %v3519_v39 }
 0x662   :  { %3106 = vmatprep.subr.bf16.mxu0 %v3457_v18  ;;  %3135 = vmatprep.subr.bf16.mxu1 %v3311_v1 }
 0x665   :  { %3108 = vmatpush1.bf16.msra.mxu0 %v3472_v23  ;;  %3137 = vmatpush3.bf16.msra.mxu1 %v3552_v49 }
 0x666   :  { %3110 = vmatprep.subr.bf16.mxu0 %v3475_v24  ;;  %3138 = vmatprep.subr.bf16.mxu1 %v3311_v1 }
 0x669   :  { %3112 = vmatpush1.bf16.msra.mxu0 %v3504_v34  ;;  %3140 = vmatpush3.bf16.msra.mxu1 %v3584_v60 }
 0x66a   :  { %3114 = vmatprep.subr.bf16.mxu0 %v3507_v35  ;;  %3141 = vmatprep.subr.bf16.mxu1 %v3311_v1  ;;  %v1338_v35 = vrot.slane %v2166_v12, 2 }
 0x66d   :  { %3116 = vmatpush1.bf16.msra.mxu0 %v3532_v43  ;;  %3143 = vmatpush3.bf16.msra.mxu1 %v3611_v9  ;;  %v1348_v9 = vrot.slane %v2166_v12, 4 }
 0x66e   :  { %3118 = vmatprep.subr.bf16.mxu0 %v3540_v45  ;;  %3144 = vmatprep.subr.bf16.mxu1 %v3311_v1 }
 0x671   :  { %3120 = vmatpush1.bf16.msra.mxu0 %v3568_v54  ;;  %3146 = vmatpush3.bf16.msra.mxu1 %v3627_v16 }
 0x672   :  { %3122 = vmatprep.subr.bf16.mxu0 %v3572_v56  ;;  %3147 = vmatprep.subr.bf16.mxu1 %v3311_v1 }
 0x675   :  { %3124 = vmatpush1.bf16.msra.mxu0 %v3598_v0  ;;  %3149 = vmatpush3.bf16.msra.mxu1 %v3638_v21 }
 0x676   :  { %3126 = vmatprep.subr.bf16.mxu0 %v3602_v5  ;;  %3150 = vmatprep.subr.bf16.mxu1 %v3311_v1 }
 0x679   :  { %3128 = vmatpush1.bf16.msra.mxu0 %v3622_v14  ;;  %3152 = vmatpush3.bf16.msra.mxu1 %v3652_v26 }
 0x67a   :  { %3153 = vmatprep.subr.bf16.mxu0 %v3311_v1  ;;  %2638 = vmatprep.subr.msk.mxu1 %vm1556_vm15, %v1541_v11 }
 0x72f   :  { %v1255_v17 = vpop.f32.mrb[12].mxu0  ;;  %v1326_v18 = vpop.f32.mrb[12].mxu1 }
 0x730   :  { %v1256_v23 = vadd.f32 %v1255_v17, %v3703_v33  ;;  %v1257_v24 = vpop.f32.mrb[13].mxu0  ;;  %v2602_v31 = vpop.f32.mrb[13].mxu1  ;;  %v1327_v5 = vadd.f32 %v1326_v18, %v3717_v59  ;;  %v1850_v17 = vld [vmem:[%s4178_s11 + $0x58] sm:$0xff] }
 0x731   :  { %v1258_v34 = vadd.f32 %v1257_v24, %v3706_v36  ;;  %v1852_v24 = vld [vmem:[%s4178_s11 + $0x68] sm:$0xff] }
 0x732   :  { %v1330_v39 = vadd.f32 %v2166_v12, %v1256_v23  ;;  %v1849_v12 = vld [vmem:[%s4178_s11 + $0x50] sm:$0xff]  ;;  %v1851_v23 = vld [vmem:[%s4178_s11 + $0x60] sm:$0xff] }
 0x733   :  { %v1340_v45 = vadd.f32 %v1338_v35, %v1258_v34  ;;  %v3169_v18 = vpack.c.bf16 %v1850_v17, %v1849_v12  ;;  %v3172_v31 = vpack.c.bf16 %v1852_v24, %v1851_v23  ;;  %v1853_v34 = vld [vmem:[%s4178_s11 + $0x70] sm:$0xff]  ;;  %v1854_v35 = vld [vmem:[%s4178_s11 + $0x78] sm:$0xff] }
 0x734   :  { %v2167_v43 = vmul.f32 -1.442695, %v1330_v39  ;;  %v3175_v39 = vpack.c.bf16 %v1854_v35, %v1853_v34 }
 0x735   :  { %v2168_v49 = vmul.f32 -1.442695, %v1340_v45 }
 0x736   :  { %3264 = vpow2.f32 %v2167_v43  ;;  %v4096_v43 = vld [vmem:[%s4167_s0 + $0x2a] sm:$0x3f] }
 0x737   :  { %3266 = vpow2.f32 %v2168_v49 }
 0x740   :  { %v3265_v54 = vpop.eup %3264 }
 0x741   :  { %v1334_v56 = vadd.f32 1.0, %v3265_v54  ;;  %v3267_v60 = vpop.eup %3266  ;;  %v1514_v54 = vrot.slane %v4096_v43, 2 }
 0x742   :  { %v1344_v0 = vadd.f32 1.0, %v3267_v60 }
 0x743   :  { %3268 = vrcp.f32 %v1334_v56 }
 0x744   :  { %3270 = vrcp.f32 %v1344_v0 }
 0x74d   :  { %v3269_v14 = vpop.eup %3268 }
 0x74e   :  { %v1347_v16 = vmul.f32 %v3269_v14, %v1327_v5  ;;  %v3271_v26 = vpop.eup %3270 }
 0x74f   :  { %v1352_v15 = vsub.f32 1.0, %v3271_v26  ;;  %v1354_v25 = vmul.f32 %v3271_v26, %v3961_v13  ;;  %v2179_v26 = vld [vmem:[%s4175_s8] ss:$0 sm:$0xff] }
 0x750   :  { %v1350_v21 = vadd.f32 %v1348_v9, %v1347_v16 }
 0x752   :  { %3272 = vtanh.f32 %v1350_v21 }
 0x75c   :  { %v3273_v19 = vpop.eup %3272 }
 0x75d   :  { %v1353_v22 = vmul.f32 %v3273_v19, %v1352_v15  ;;  %v1755_v19 = vsub.s32 4, %v3691_v28 }
 0x75f   :  { %v1355_v27 = vadd.f32 %v1354_v25, %v1353_v22 }
 0x761   :  { %v4014_v38 = vsel %vm1361_vm1, %v1355_v27, %v3961_v13  ;;  %v1848_v13 = vld [vmem:[%s4178_s11 + $0x48] sm:$0xff] }
 0x762   :  { %1430 = vmatmul.mubr.f32.vlgmr.msra.gmra.mrb[14].mxu0 %v4014_v38  ;;  %2636 = vmatmul.mubr.f32.vlgmr.msra.gmra.mrb[14].mxu1 %v4014_v38 }
 0x763   :  { %2639 = vmatpush3.msk.msra.mxu1 %vm1556_vm15, %v1541_v11  ;;  %2640 = vmatprep.mubr.msk.f32.mxu1 %vm1549_vm2, %v1539_v37  ;;  %v3166_v11 = vpack.c.bf16 %v1848_v13, %v1847_v10 }
 0x764   :  { %2643 = vmatprep.subr.msk.mxu1 %vm1556_vm15, %v1637_v40  ;;  %2680 = vmatprep.mubr.msk.f32.mxu0 %vm3313_vm0, %v3312_v2  ;;  %v1841_v2 = vld [vmem:[%s4178_s11 + $0x10] sm:$0xff]  ;;  %vm1941_vm0 = vcmask 261120  }
 0x765   :  { %3155 = vmatpush3.bf16.msra.mxu0 %v3154_v46  ;;  %v3157_v7 = vpack.c.bf16 %v1842_v47, %v1841_v2 }
 0x766   :  { %2641 = vmatmul.mubr.msk.f32.vlgmr.msra.gmra.mrb[16].mxu1 %vm1549_vm2, %v1540_v30  ;;  %3156 = vmatprep.subr.bf16.mxu0 %v3311_v1 }
 0x767   :  { %2644 = vmatpush3.msk.msra.mxu1 %vm1556_vm15, %v1637_v40  ;;  %2645 = vmatprep.mubr.msk.f32.mxu1 %vm1549_vm2, %v1539_v37  ;;  %v1769_v37 = vsub.s32 6, %v3691_v28  ;;  %v1776_v40 = vsub.s32 7, %v3691_v28 }
 0x768   :  { %3178 = vmatprep.subr.bf16.mxu1 %v3177_v51 }
 0x769   :  { %3158 = vmatpush3.bf16.msra.mxu0 %v3157_v7 }
 0x76a   :  { %2646 = vmatmul.mubr.msk.f32.vlgmr.msra.gmra.mrb[18].mxu1 %vm1549_vm2, %v1540_v30  ;;  %3159 = vmatprep.subr.bf16.mxu0 %v3311_v1 }
 0x76b   :  { %3180 = vmatpush3.bf16.msra.mxu1 %v3177_v51 }
 0x76c   :  { %3182 = vmatprep.subr.bf16.mxu1 %v3181_v61 }
 0x76d   :  { %3161 = vmatpush3.bf16.msra.mxu0 %v3160_v55 }
 0x76e   :  { %3162 = vmatprep.subr.bf16.mxu0 %v3311_v1 }
 0x76f   :  { %3184 = vmatpush3.bf16.msra.mxu1 %v3181_v61 }
 0x770   :  { %3186 = vmatprep.subr.bf16.mxu1 %v4063_v8 }
 0x771   :  { %3164 = vmatpush3.bf16.msra.mxu0 %v3163_v63 }
 0x772   :  { %3165 = vmatprep.subr.bf16.mxu0 %v3311_v1 }
 0x775   :  { %3167 = vmatpush3.bf16.msra.mxu0 %v3166_v11 }
 0x776   :  { %3168 = vmatprep.subr.bf16.mxu0 %v3311_v1 }
 0x779   :  { %3170 = vmatpush3.bf16.msra.mxu0 %v3169_v18 }
 0x77a   :  { %3171 = vmatprep.subr.bf16.mxu0 %v3311_v1 }
 0x77d   :  { %3173 = vmatpush3.bf16.msra.mxu0 %v3172_v31 }
 0x77e   :  { %3174 = vmatprep.subr.bf16.mxu0 %v3311_v1 }
 0x781   :  { %3176 = vmatpush3.bf16.msra.mxu0 %v3175_v39 }
 0x835   :  { %v1431_v45 = vpop.f32.mrb[14].mxu0  ;;  %v4098_v49 = vpop.f32.mrb[14].mxu1 }
 0x836   :  { %v1432_v56 = vadd.f32 %v1431_v45, %v3703_v33  ;;  %v1433_v60 = vpop.f32.mrb[15].mxu0  ;;  %v2637_v0 = vpop.f32.mrb[15].mxu1  ;;  %v1748_v33 = vsub.s32 3, %v3691_v28 }
 0x837   :  { %v1434_v5 = vadd.f32 %v1433_v60, %v3706_v36  ;;  %v1762_v36 = vsub.s32 5, %v3691_v28 }
 0x838   :  { %v1506_v9 = vadd.f32 %v4096_v43, %v1432_v56 }
 0x839   :  { %v1516_v1 = vadd.f32 %v1514_v54, %v1434_v5  ;;  %v4104_v14 = vpop.f32.mrb[16].mxu1 }
 0x83a   :  { %v2170_v16 = vmul.f32 -1.442695, %v1506_v9  ;;  %v4106_v21 = vpop.f32.mrb[17].mxu1 }
 0x83b   :  { %v2171_v15 = vmul.f32 -1.442695, %v1516_v1 }
 0x83c   :  { %3274 = vpow2.f32 %v2170_v16 }
 0x83d   :  { %v2647_v20 = vpop.f32.mrb[18].mxu1  ;;  %3276 = vpow2.f32 %v2171_v15 }
 0x83e   :  { %v4114_v22 = vadd.f32 %v2647_v20, %v2179_v26  ;;  %v1785_v25 = vrot.slane %v2647_v20, %v3694_v29  ;;  %v1707_v27 = vpop.f32.mrb[19].mxu1  ;;  %v1792_v2 = vrot.slane %v2647_v20, %v3700_v32  ;;  %v1799_v4 = vrot.slane %v2647_v20, %v3714_v58 }
 0x83f   :  { %v1723_v30 = vadd.f32 %v2179_v26, %v1707_v27  ;;  %v1728_v41 = vrot.slane %v1707_v27, %v3694_v29  ;;  %v1735_v42 = vrot.slane %v1707_v27, %v3700_v32  ;;  %v1742_v46 = vrot.slane %v1707_v27, %v3714_v58 }
 0x840   :  { %v1749_v47 = vrot.slane %v1707_v27, %v1748_v33  ;;  %v1756_v7 = vrot.slane %v1707_v27, %v1755_v19  ;;  %v1763_v52 = vrot.slane %v1707_v27, %v1762_v36  ;;  %v1786_v53 = vsub.f32 %v4114_v22, %v1785_v25 }
 0x841   :  { %v1729_v48 = vsub.f32 %v1723_v30, %v1728_v41  ;;  %v1736_v50 = vsub.f32 %v1723_v30, %v1735_v42  ;;  %v1743_v51 = vsub.f32 %v1723_v30, %v1742_v46  ;;  %v1770_v57 = vrot.slane %v1707_v27, %v1769_v37 }
 0x842   :  { %v1750_v55 = vsub.f32 %v1723_v30, %v1749_v47  ;;  %v1757_v28 = vsub.f32 %v1723_v30, %v1756_v7  ;;  %v1764_v62 = vsub.f32 %v1723_v30, %v1763_v52  ;;  %v1793_v63 = vsub.f32 %v4114_v22, %v1792_v2  ;;  %v2172_v52 = vld [vmem:[%s4173_s6] ss:$0 sm:$0xff] }
 0x843   :  { %v1730_v44 = vmax.f32 %v1729_v48, 0.0  ;;  %v1737_v61 = vmax.f32 %v1736_v50, 0.0  ;;  %v1744_v3 = vmax.f32 %v1743_v51, 0.0  ;;  %v1806_v13 = vrot.slane %v2647_v20, %v1748_v33 }
 0x844   :  { %v1751_v10 = vmax.f32 %v1750_v55, 0.0  ;;  %v1813_v11 = vrot.slane %v2647_v20, %v1755_v19  ;;  %v1758_v17 = vmax.f32 %v1757_v28, 0.0  ;;  %v1771_v18 = vsub.f32 %v1723_v30, %v1770_v57 }
 0x845   :  { %v1738_v6 = vadd.f32 %v1737_v61, %v1730_v44  ;;  %v1777_v23 = vrot.slane %v1707_v27, %v1776_v40  ;;  %v1820_v24 = vrot.slane %v2647_v20, %v1762_v36  ;;  %v1765_v35 = vmax.f32 %v1764_v62, 0.0 }
 0x846   :  { %v3275_v12 = vpop.eup %3274  ;;  %v1787_v39 = vmax.f32 %v1786_v53, 0.0  ;;  %v1827_v45 = vrot.slane %v2647_v20, %v1769_v37  ;;  %v1794_v54 = vmax.f32 %v1793_v63, 0.0  ;;  %v1800_v56 = vsub.f32 %v4114_v22, %v1799_v4 }
 0x847   :  { %v1510_v31 = vadd.f32 1.0, %v3275_v12  ;;  %v1745_v34 = vadd.f32 %v1744_v3, %v1738_v6  ;;  %v1807_v60 = vsub.f32 %v4114_v22, %v1806_v13  ;;  %v1834_v0 = vrot.slane %v2647_v20, %v1776_v40  ;;  %v3277_v9 = vpop.eup %3276  ;;  %v1536_v12 = vpop.permute.xlu1 %1535 }
 0x848   :  { %v1814_v5 = vsub.f32 %v4114_v22, %v1813_v11  ;;  %v1795_v1 = vadd.f32 %v1794_v54, %v1787_v39  ;;  %v1801_v16 = vmax.f32 %v1800_v56, 0.0  ;;  %v1821_v15 = vsub.f32 %v4114_v22, %v1820_v24 }
 0x849   :  { %3278 = vrcp.f32 %v1510_v31  ;;  %v1752_v58 = vadd.f32 %v1751_v10, %v1745_v34  ;;  %v1808_v26 = vmax.f32 %v1807_v60, 0.0  ;;  %v1772_v19 = vmax.f32 %v1771_v18, 0.0 }
 0x84a   :  { %v1778_v36 = vsub.f32 %v1723_v30, %v1777_v23  ;;  %v1802_v25 = vadd.f32 %v1801_v16, %v1795_v1  ;;  %v1815_v27 = vmax.f32 %v1814_v5, 0.0  ;;  %v1828_v37 = vsub.f32 %v4114_v22, %v1827_v45  ;;  %v2184_v45 = vld [vmem:[%s4179_s12] ss:$0 sm:$0xff] }
 0x84b   :  { %v1759_v33 = vadd.f32 %v1758_v17, %v1752_v58  ;;  %v1822_v46 = vmax.f32 %v1821_v15, 0.0  ;;  %v1835_v20 = vsub.f32 %v4114_v22, %v1834_v0  ;;  %v1520_v47 = vadd.f32 1.0, %v3277_v9 }
 0x84c   :  { %v1809_v42 = vadd.f32 %v1808_v26, %v1802_v25  ;;  %v1779_v2 = vmax.f32 %v1778_v36, 0.0  ;;  %v1829_v48 = vmax.f32 %v1828_v37, 0.0  ;;  %v1524_v50 = vrot.slane %v4096_v43, 4  ;;  %v1936_v43 = vld [vmem:[%s4176_s9 + $0x18] sm:$0xff] }
 0x84d   :  { %v1766_v41 = vadd.f32 %v1765_v35, %v1759_v33  ;;  %v1503_v30 = vadd.f32 %v4098_v49, %v3717_v59  ;;  %v1836_v55 = vmax.f32 %v1835_v20, 0.0  ;;  %3280 = vrcp.f32 %v1520_v47  ;;  %v1935_v59 = vld [vmem:[%s4176_s9 + $0x10] sm:$0xff] }
 0x84e   :  { %v1816_v7 = vadd.f32 %v1815_v27, %v1809_v42  ;;  %v1627_v61 = vadd.f32 %v2172_v52, %v4106_v21  ;;  %v3189_v63 = vpack.c.bf16 %v1936_v43, %v1935_v59  ;;  %v1632_v21 = vadd.f32 %v4104_v14, %v2172_v52 }
 0x84f   :  { %v1773_v40 = vadd.f32 %v1772_v19, %v1766_v41  ;;  %vm1537_vm3 = vcmp.eq.s32.totalorder %v1536_v12, 1 }
 0x850   :  { %v1823_v53 = vadd.f32 %v1822_v46, %v1816_v7  ;;  %v1635_v4 = vmax.f32 %v1627_v61, 0.0  ;;  %v1636_v10 = vmax.f32 %v1632_v21, 0.0 }
 0x851   :  { %v1780_v51 = vadd.f32 %v1779_v2, %v1773_v40 }
 0x852   :  { %v1830_v44 = vadd.f32 %v1829_v48, %v1823_v53 }
 0x853   :  { %v3279_v28 = vpop.eup %3278  ;;  %v1781_v22 = vmul.f32 0.125, %v1780_v51 }
 0x854   :  { %v1523_v57 = vmul.f32 %v3279_v28, %v1503_v30  ;;  %v1837_v3 = vadd.f32 %v1836_v55, %v1830_v44 }
 0x855   :  { %2691 = vmatprep.mubr.msk.f32.mxu1 %vm1941_vm0, %v1781_v22 }
 0x856   :  { %v1526_v49 = vadd.f32 %v1524_v50, %v1523_v57  ;;  %v1838_v62 = vmul.f32 0.125, %v1837_v3 }
 0x857   :  { %v3281_v6 = vpop.eup %3280 }
 0x858   :  { %3282 = vtanh.f32 %v1526_v49  ;;  %2692 = vmatmul.mubr.msk.f32.vlgmr.msra.gmra.mrb[20].mxu1 %vm1941_vm0, %v1838_v62  ;;  %v1528_v13 = vsub.f32 1.0, %v3281_v6  ;;  %v1530_v18 = vmul.f32 %v3281_v6, %v4014_v38 }
 0x859   :  { %3188 = vmatpush3.bf16.msra.mxu1 %v4063_v8  ;;  %2702 = vmatprep.mubr.msk.f32.mxu1 %vm1941_vm0, %v1635_v4 }
 0x85a   :  { %3190 = vmatprep.subr.bf16.mxu1 %v3189_v63 }
 0x85d   :  { %3192 = vmatpush3.bf16.msra.mxu1 %v3189_v63 }
 0x860   :  { %2703 = vmatmul.mubr.msk.f32.vlgmr.msra.gmra.mrb[20].mxu1 %vm1941_vm0, %v1636_v10 }
 0x862   :  { %v3283_v11 = vpop.eup %3282 }
 0x863   :  { %v1529_v17 = vmul.f32 %v3283_v11, %v1528_v13 }
 0x865   :  { %v1531_v23 = vadd.f32 %v1530_v18, %v1529_v17 }
 0x867   :  { %v1538_v8 = vsel %vm1537_vm3, %v1531_v23, %v4014_v38  ;;  %v2185_v38 = vld [vmem:[%s4180_s13] ss:$0 sm:$0xff] }
 0x868   :  { %2681 = vmatmul.mubr.f32.vlgmr.msra.gmra.mrb[16].mxu0 %v1538_v8 }
 0x933   :  { %v2704_v24 = vpop.f32.mrb[20].mxu1 }
 0x934   :  { %v2095_v31 = vpop.f32.mrb[21].mxu1 }
 0x93b   :  { %v1921_v14 = vpop.f32.mrb[16].mxu0 }
 0x93c   :  { %v1928_v34 = vrot.slane %v1921_v14, %v3694_v29  ;;  %v1932_v35 = vrot.slane %v1921_v14, %v3700_v32  ;;  %v2682_v39 = vpop.f32.mrb[17].mxu0  ;;  %v2186_v29 = vld [vmem:[#allocation2] ss:$0 sm:$0xff] }
 0x93e   :  { %v2104_v54 = vadd.f32 %v2095_v31, %v1928_v34  ;;  %v2105_v56 = vadd.f32 %v2704_v24, %v1932_v35 }
 0x940   :  { %v2114_v60 = vadd.f32 %v2184_v45, %v2105_v56  ;;  %v2113_v58 = vadd.f32 %v2184_v45, %v2104_v54 }
 0x942   :  { %v2116_v0 = vmax.f32 %v2114_v60, 0.0  ;;  %v2115_v5 = vmax.f32 %v2113_v58, 0.0 }
 0x944   :  { %v2125_v9 = vmul.f32 %v2185_v38, %v2116_v0  ;;  %v2124_v1 = vmul.f32 %v2185_v38, %v2115_v5 }
 0x946   :  { %2128 = vadd.xlane.f32.xlu1 %v2125_v9  ;;  %2126 = vadd.xlane.f32.xlu0 %v2124_v1 }
 0x9d3   :  { %v2129_v32 = vpop.xlane.xlu1 %2128  ;;  %v2127_v16 = vpop.xlane.xlu0 %2126 }
 0x9d4   :  { %v2138_v26 = vadd.f32 %v2186_v29, %v2129_v32  ;;  %v2137_v15 = vadd.f32 %v2186_v29, %v2127_v16 }
 0x9d6   :  { %2141 = vst.msk [vmem:[%s4182_s15 + $0x8] sm:$0xff] %vm2139_vm4, %v2138_v26  ;;  %2140 = vst.msk [vmem:[%s4182_s15] sm:$0xff] %vm2139_vm4, %v2137_v15 }
 0x9d7   :  { %2146 = vsyncpa [#allocation4], 1 }

</bundles_post_ra>
